<compile_context>
chip_gen: v6e
topology: v6e:2x2x1
jax: 0.10.0
libtpu: 0.0.40
codegen_flags: <defaults>
</compile_context>

<pallas_src>
import jax
import jax.numpy as jnp
from jax.experimental import pallas as pl
from jax.experimental.pallas import tpu as pltpu

N_HOPS = 2
_EPS = 1e-10


def _round_up(x, m):
    return ((x + m - 1) // m) * m


def kv_memory_reader_kernel(q_ref, ent_ref, rel_ref, value_ref, memw_ref,
                            wce_ref, bce_ref, wcr_ref, bcr_ref, wr_ref, br_ref,
                            out_ref):
    # Per-grid-step tile views (TB = batch tile):
    #   q_ref     : (TB, H)
    #   ent/rel   : (TB, M, E)   (bf16 or f32 storage; upcast below)
    #   value_ref : (TB, M, E)
    #   memw_ref  : (TB, 1, M)
    #   wce/wcr   : (H, E)       bce/bcr : (1, E)
    #   wr        : (E, H)       br      : (1, H)
    f32 = jnp.float32
    q_i = q_ref[...].astype(f32)          # (TB, H)
    ent = ent_ref[...].astype(f32)        # (TB, M, E)
    rel = rel_ref[...].astype(f32)        # (TB, M, E)
    value = value_ref[...].astype(f32)    # (TB, M, E)
    memw = memw_ref[...].astype(f32)      # (TB, 1, M)
    wce = wce_ref[...]
    bce = bce_ref[...]
    wcr = wcr_ref[...]
    bcr = bcr_ref[...]
    wr = wr_ref[...]
    br = br_ref[...]

    for _ in range(N_HOPS):
        # C(q_i), split into the ent-half and rel-half of the 2E-wide projection.
        qe = jnp.dot(q_i, wce, preferred_element_type=f32) + bce   # (TB, E)
        qr = jnp.dot(q_i, wcr, preferred_element_type=f32) + bcr   # (TB, E)

        # scores[b, m] = <qe[b], ent[b, m]> + <qr[b], rel[b, m]>
        scores = (jnp.einsum("bte,bme->btm", qe[:, None, :], ent,
                             preferred_element_type=f32)
                  + jnp.einsum("bte,bme->btm", qr[:, None, :], rel,
                               preferred_element_type=f32))        # (TB, 1, M)

        # Masked softmax over memory slots, with the softmax normalization folded
        # into the mask renormalization (algebraically identical up to eps scale).
        m_max = jnp.max(scores, axis=-1, keepdims=True)
        p = jnp.exp(scores - m_max)
        num = p * memw
        denom = jnp.sum(num, axis=-1, keepdims=True) + _EPS
        att = num * pl.reciprocal(denom, approx=True)              # (TB, 1, M)

        # ot[b] = sum_m att[b, m] * value[b, m, :]
        ot3 = jnp.einsum("btm,bme->bte", att, value,
                         preferred_element_type=f32)               # (TB, 1, E)
        ot = ot3[:, 0, :]                                          # (TB, E)

        # q_i = q_i + R(ot)
        q_i = q_i + jnp.dot(ot, wr, preferred_element_type=f32) + br

    out_ref[...] = q_i.astype(out_ref.dtype)


def _pick_batch_tile(B, M, E, H, store_bytes):
    """Largest batch tile that keeps buffered tiles well under VMEM on all gens."""
    per_row = (2 * 3 * M * E * store_bytes        # ent/rel/value, double-buffered
               + 2 * (M + H) * 4                  # mem_weights + q, double-buffered
               + 2 * H * 4                        # output, double-buffered
               + 3 * M * E * 4 + 8 * E + 4 * M + 8 * H)  # f32 compute temporaries
    budget = 20 * 1024 * 1024                     # conservative even for v7x (64 MiB)
    tb = max(8, min(512, budget // max(per_row, 1)))
    tb = (tb // 8) * 8                            # sublane alignment
    tb = min(tb, _round_up(B, 8))
    return max(8, tb)


def kv_memory_reader(q, ent, rel, value, mem_weights, params,
                     store_dtype=jnp.bfloat16):
    """q:(B,1,H), ent/rel/value:(B,M,E), mem_weights:(B,M) -> (B,1,H)."""
    B, _, H = q.shape
    M, E = ent.shape[1], ent.shape[2]
    out_dtype = q.dtype

    # Layout glue in plain JAX (no HBM key concat): 2D q, lane-dense mem_weights,
    # C split into ent/rel halves, weights pre-transposed for row-major matmuls.
    q2 = q.reshape(B, H).astype(jnp.float32)
    memw = mem_weights.reshape(B, 1, M).astype(jnp.float32)
    ent_s = ent.astype(store_dtype)
    rel_s = rel.astype(store_dtype)
    val_s = value.astype(store_dtype)

    wc = params["wc"].astype(jnp.float32)         # (2E, H) PyTorch Linear layout
    bc = params["bc"].astype(jnp.float32)         # (2E,)
    wr = params["wr"].astype(jnp.float32)         # (H, E)
    br = params["br"].astype(jnp.float32)         # (H,)
    wce_t = wc[:E, :].T                           # (H, E) -> multiplies ent
    wcr_t = wc[E:, :].T                           # (H, E) -> multiplies rel
    bce = bc[:E].reshape(1, E)
    bcr = bc[E:].reshape(1, E)
    wr_t = wr.T                                   # (E, H)
    br2 = br.reshape(1, H)

    store_bytes = jnp.dtype(store_dtype).itemsize
    TB = _pick_batch_tile(B, M, E, H, store_bytes)
    B_pad = _round_up(B, TB)
    if B_pad != B:
        pad = [(0, B_pad - B)]
        q2 = jnp.pad(q2, pad + [(0, 0)])
        memw = jnp.pad(memw, pad + [(0, 0), (0, 0)])
        ent_s = jnp.pad(ent_s, pad + [(0, 0), (0, 0)])
        rel_s = jnp.pad(rel_s, pad + [(0, 0), (0, 0)])
        val_s = jnp.pad(val_s, pad + [(0, 0), (0, 0)])

    out = pl.pallas_call(
        kv_memory_reader_kernel,
        out_shape=jax.ShapeDtypeStruct((B_pad, H), out_dtype),
        grid_spec=pltpu.PrefetchScalarGridSpec(
            num_scalar_prefetch=0,
            grid=(B_pad // TB,),
            in_specs=[
                pl.BlockSpec((TB, H), lambda i: (i, 0)),          # q
                pl.BlockSpec((TB, M, E), lambda i: (i, 0, 0)),    # ent
                pl.BlockSpec((TB, M, E), lambda i: (i, 0, 0)),    # rel
                pl.BlockSpec((TB, M, E), lambda i: (i, 0, 0)),    # value
                pl.BlockSpec((TB, 1, M), lambda i: (i, 0, 0)),    # mem_weights
                pl.BlockSpec((H, E), lambda i: (0, 0)),           # C.weight^T (ent half)
                pl.BlockSpec((1, E), lambda i: (0, 0)),           # C.bias (ent half)
                pl.BlockSpec((H, E), lambda i: (0, 0)),           # C.weight^T (rel half)
                pl.BlockSpec((1, E), lambda i: (0, 0)),           # C.bias (rel half)
                pl.BlockSpec((E, H), lambda i: (0, 0)),           # R.weight^T
                pl.BlockSpec((1, H), lambda i: (0, 0)),           # R.bias
            ],
            out_specs=pl.BlockSpec((TB, H), lambda i: (i, 0)),
        ),
        compiler_params=pltpu.CompilerParams(
            dimension_semantics=("parallel",),          # batch axis is truly parallel
            vmem_limit_bytes=48 * 1024 * 1024,          # explicit: v5e default is 16 MiB
        ),
    )(q2, ent_s, rel_s, val_s, memw, wce_t, bce, wcr_t, bcr, wr_t, br2)

    return out[:B].reshape(B, 1, H)


def kv_memory_reader_ref(q, ent, rel, value, mem_weights, params):
    """Pure-JAX reference mirroring the PyTorch forward (eval mode)."""
    key = jnp.concatenate([ent, rel], axis=2)                      # (B, M, 2E)
    q_i = q
    for _ in range(N_HOPS):
        q_temp = jnp.einsum("bth,eh->bte", q_i, params["wc"]) + params["bc"]
        scores = jnp.sum(q_temp * key, axis=2)                     # (B, M)
        soft = jax.nn.softmax(scores, axis=1)
        att = soft * mem_weights
        att = att / (jnp.sum(att, axis=1, keepdims=True) + _EPS)
        ot = jnp.sum(att[:, :, None] * value, axis=1)[:, None, :]  # (B, 1, E)
        q_i = q_i + jnp.einsum("bte,he->bth", ot, params["wr"]) + params["br"]
    return q_i


if __name__ == "__main__":
    B, M, H, E = 2, 8, 32, 16  # batch, memory slots, ut_hid_size, kb_embed_size

    ks = jax.random.split(jax.random.PRNGKey(0), 9)
    q = jax.random.normal(ks[0], (B, 1, H), jnp.float32)
    ent = jax.random.normal(ks[1], (B, M, E), jnp.float32)
    rel = jax.random.normal(ks[2], (B, M, E), jnp.float32)
    value = jax.random.normal(ks[3], (B, M, E), jnp.float32)
    mem_weights = (jax.random.uniform(ks[4], (B, M)) > 0.25).astype(jnp.float32)

    params = {
        "wc": 0.1 * jax.random.normal(ks[5], (2 * E, H), jnp.float32),  # C.weight (2E, H)
        "bc": 0.1 * jax.random.normal(ks[6], (2 * E,), jnp.float32),    # C.bias   (2E,)
        "wr": 0.1 * jax.random.normal(ks[7], (H, E), jnp.float32),      # R.weight (H, E)
        "br": 0.1 * jax.random.normal(ks[8], (H,), jnp.float32),        # R.bias   (H,)
    }

    # 1) f32 storage path vs exact f32 reference.
    out_f32 = kv_memory_reader(q, ent, rel, value, mem_weights, params,
                               store_dtype=jnp.float32)
    out_f32 = jax.block_until_ready(out_f32)
    ref_f32 = kv_memory_reader_ref(q, ent, rel, value, mem_weights, params)
    assert out_f32.shape == (B, 1, H)
    assert jnp.allclose(out_f32, ref_f32, atol=1e-3, rtol=1e-3), "f32 mismatch vs reference"

    # 2) Default bf16-storage path vs reference evaluated on the same bf16-rounded
    #    streaming tensors (validates kernel math independent of storage precision).
    out_bf16 = kv_memory_reader(q, ent, rel, value, mem_weights, params)
    out_bf16 = jax.block_until_ready(out_bf16)
    rnd = lambda x: x.astype(jnp.bfloat16).astype(jnp.float32)
    ref_bf16 = kv_memory_reader_ref(q, rnd(ent), rnd(rel), rnd(value),
                                    mem_weights, params)
    assert out_bf16.shape == (B, 1, H)
    assert jnp.allclose(out_bf16, ref_bf16, atol=3e-3, rtol=3e-3), "bf16 mismatch vs reference"

    print("KERNEL_OK")
</pallas_src>

<mosaic_0001>
module attributes {stable_mosaic.version = 11 : i64} {
  func.func @kv_memory_reader_kernel(%arg0: i32, %arg1: memref<8x32xf32, #tpu.memory_space<vmem>>, %arg2: memref<8x8x16xf32, #tpu.memory_space<vmem>>, %arg3: memref<8x8x16xf32, #tpu.memory_space<vmem>>, %arg4: memref<8x8x16xf32, #tpu.memory_space<vmem>>, %arg5: memref<8x1x8xf32, #tpu.memory_space<vmem>>, %arg6: memref<32x16xf32, #tpu.memory_space<vmem>>, %arg7: memref<1x16xf32, #tpu.memory_space<vmem>>, %arg8: memref<32x16xf32, #tpu.memory_space<vmem>>, %arg9: memref<1x16xf32, #tpu.memory_space<vmem>>, %arg10: memref<16x32xf32, #tpu.memory_space<vmem>>, %arg11: memref<1x32xf32, #tpu.memory_space<vmem>>, %arg12: memref<8x32xf32, #tpu.memory_space<vmem>>) attributes {dimension_semantics = [#tpu.dimension_semantics<parallel>], iteration_bounds = array<i64: 1>, scalar_prefetch = 0 : i64, scratch_operands = 0 : i64, tpu.core_type = #tpu.core_type<tc>, window_params = [{transform_indices = @transform_0, window_bounds = array<i64: 8, 32>}, {transform_indices = @transform_1, window_bounds = array<i64: 8, 8, 16>}, {transform_indices = @transform_2, window_bounds = array<i64: 8, 8, 16>}, {transform_indices = @transform_3, window_bounds = array<i64: 8, 8, 16>}, {transform_indices = @transform_4, window_bounds = array<i64: 8, 1, 8>}, {pipeline_mode = #tpu.pipeline_mode<synchronous>, transform_indices = @transform_5, window_bounds = array<i64: 32, 16>}, {pipeline_mode = #tpu.pipeline_mode<synchronous>, transform_indices = @transform_6, window_bounds = array<i64: 1, 16>}, {pipeline_mode = #tpu.pipeline_mode<synchronous>, transform_indices = @transform_7, window_bounds = array<i64: 32, 16>}, {pipeline_mode = #tpu.pipeline_mode<synchronous>, transform_indices = @transform_8, window_bounds = array<i64: 1, 16>}, {pipeline_mode = #tpu.pipeline_mode<synchronous>, transform_indices = @transform_9, window_bounds = array<i64: 16, 32>}, {pipeline_mode = #tpu.pipeline_mode<synchronous>, transform_indices = @transform_10, window_bounds = array<i64: 1, 32>}, {transform_indices = @transform_11, window_bounds = array<i64: 8, 32>}]} {
    %c0 = arith.constant 0 : index
    %c0_0 = arith.constant 0 : index
    %0 = vector.load %arg1[%c0, %c0_0] : memref<8x32xf32, #tpu.memory_space<vmem>>, vector<8x32xf32>
    %c0_1 = arith.constant 0 : index
    %c0_2 = arith.constant 0 : index
    %c0_3 = arith.constant 0 : index
    %1 = vector.load %arg2[%c0_1, %c0_2, %c0_3] : memref<8x8x16xf32, #tpu.memory_space<vmem>>, vector<8x8x16xf32>
    %c0_4 = arith.constant 0 : index
    %c0_5 = arith.constant 0 : index
    %c0_6 = arith.constant 0 : index
    %2 = vector.load %arg3[%c0_4, %c0_5, %c0_6] : memref<8x8x16xf32, #tpu.memory_space<vmem>>, vector<8x8x16xf32>
    %c0_7 = arith.constant 0 : index
    %c0_8 = arith.constant 0 : index
    %c0_9 = arith.constant 0 : index
    %3 = vector.load %arg4[%c0_7, %c0_8, %c0_9] : memref<8x8x16xf32, #tpu.memory_space<vmem>>, vector<8x8x16xf32>
    %c0_10 = arith.constant 0 : index
    %c0_11 = arith.constant 0 : index
    %c0_12 = arith.constant 0 : index
    %4 = vector.load %arg5[%c0_10, %c0_11, %c0_12] : memref<8x1x8xf32, #tpu.memory_space<vmem>>, vector<8x1x8xf32>
    %c0_13 = arith.constant 0 : index
    %c0_14 = arith.constant 0 : index
    %5 = vector.load %arg6[%c0_13, %c0_14] : memref<32x16xf32, #tpu.memory_space<vmem>>, vector<32x16xf32>
    %c0_15 = arith.constant 0 : index
    %c0_16 = arith.constant 0 : index
    %6 = vector.load %arg7[%c0_15, %c0_16] : memref<1x16xf32, #tpu.memory_space<vmem>>, vector<1x16xf32>
    %c0_17 = arith.constant 0 : index
    %c0_18 = arith.constant 0 : index
    %7 = vector.load %arg8[%c0_17, %c0_18] : memref<32x16xf32, #tpu.memory_space<vmem>>, vector<32x16xf32>
    %c0_19 = arith.constant 0 : index
    %c0_20 = arith.constant 0 : index
    %8 = vector.load %arg9[%c0_19, %c0_20] : memref<1x16xf32, #tpu.memory_space<vmem>>, vector<1x16xf32>
    %c0_21 = arith.constant 0 : index
    %c0_22 = arith.constant 0 : index
    %9 = vector.load %arg10[%c0_21, %c0_22] : memref<16x32xf32, #tpu.memory_space<vmem>>, vector<16x32xf32>
    %c0_23 = arith.constant 0 : index
    %c0_24 = arith.constant 0 : index
    %10 = vector.load %arg11[%c0_23, %c0_24] : memref<1x32xf32, #tpu.memory_space<vmem>>, vector<1x32xf32>
    %cst = arith.constant dense<0.000000e+00> : vector<8x16xf32>
    %11 = tpu.matmul %0, %5, %cst {dimension_numbers = #tpu.dot_dimension_numbers<[1], [0], [0], [1], [0, 0, 1, 1], [], []>} : vector<8x32xf32>, vector<32x16xf32>, vector<8x16xf32> -> vector<8x16xf32>
    %12 = vector.broadcast %6 : vector<1x16xf32> to vector<8x16xf32>
    %13 = arith.addf %11, %12 : vector<8x16xf32>
    %cst_25 = arith.constant dense<0.000000e+00> : vector<8x16xf32>
    %14 = tpu.matmul %0, %7, %cst_25 {dimension_numbers = #tpu.dot_dimension_numbers<[1], [0], [0], [1], [0, 0, 1, 1], [], []>} : vector<8x32xf32>, vector<32x16xf32>, vector<8x16xf32> -> vector<8x16xf32>
    %15 = vector.broadcast %8 : vector<1x16xf32> to vector<8x16xf32>
    %16 = arith.addf %14, %15 : vector<8x16xf32>
    %17 = vector.shape_cast %13 : vector<8x16xf32> to vector<8x1x16xf32>
    "tpu.trace_start"() <{level = 10 : i32, message = "bte,bme->btm"}> : () -> ()
    %cst_26 = arith.constant dense<0.000000e+00> : vector<8x1x8xf32>
    %18 = tpu.matmul %17, %1, %cst_26 {dimension_numbers = #tpu.dot_dimension_numbers<[2], [2], [1], [1], [0, 0, 0, 1, 1, 1], [0], [0]>} : vector<8x1x16xf32>, vector<8x8x16xf32>, vector<8x1x8xf32> -> vector<8x1x8xf32>
    "tpu.trace_stop"() : () -> ()
    %19 = vector.shape_cast %16 : vector<8x16xf32> to vector<8x1x16xf32>
    "tpu.trace_start"() <{level = 10 : i32, message = "bte,bme->btm"}> : () -> ()
    %cst_27 = arith.constant dense<0.000000e+00> : vector<8x1x8xf32>
    %20 = tpu.matmul %19, %2, %cst_27 {dimension_numbers = #tpu.dot_dimension_numbers<[2], [2], [1], [1], [0, 0, 0, 1, 1, 1], [0], [0]>} : vector<8x1x16xf32>, vector<8x8x16xf32>, vector<8x1x8xf32> -> vector<8x1x8xf32>
    "tpu.trace_stop"() : () -> ()
    %21 = arith.addf %18, %20 : vector<8x1x8xf32>
    %cst_28 = arith.constant dense<0xFF800000> : vector<8x1xf32>
    %22 = vector.multi_reduction <maximumf>, %21, %cst_28 [2] : vector<8x1x8xf32> to vector<8x1xf32>
    %23 = vector.shape_cast %22 : vector<8x1xf32> to vector<8x1x1xf32>
    %24 = vector.broadcast %23 : vector<8x1x1xf32> to vector<8x1x8xf32>
    %25 = arith.subf %21, %24 : vector<8x1x8xf32>
    %26 = math.exp %25 : vector<8x1x8xf32>
    %27 = arith.mulf %26, %4 : vector<8x1x8xf32>
    %cst_29 = arith.constant dense<0.000000e+00> : vector<8x1xf32>
    %28 = vector.multi_reduction <add>, %27, %cst_29 [2] : vector<8x1x8xf32> to vector<8x1xf32>
    %29 = vector.shape_cast %28 : vector<8x1xf32> to vector<8x1x1xf32>
    %cst_30 = arith.constant 1.000000e-10 : f32
    %30 = vector.broadcast %cst_30 : f32 to vector<8x1x1xf32>
    %31 = arith.addf %29, %30 : vector<8x1x1xf32>
    %32 = tpu.reciprocal %31 {approx = true} : vector<8x1x1xf32> -> vector<8x1x1xf32>
    %33 = vector.broadcast %32 : vector<8x1x1xf32> to vector<8x1x8xf32>
    %34 = arith.mulf %27, %33 : vector<8x1x8xf32>
    "tpu.trace_start"() <{level = 10 : i32, message = "btm,bme->bte"}> : () -> ()
    %cst_31 = arith.constant dense<0.000000e+00> : vector<8x1x16xf32>
    %35 = tpu.matmul %34, %3, %cst_31 {dimension_numbers = #tpu.dot_dimension_numbers<[2], [1], [1], [2], [0, 0, 0, 1, 1, 2], [0], [0]>} : vector<8x1x8xf32>, vector<8x8x16xf32>, vector<8x1x16xf32> -> vector<8x1x16xf32>
    "tpu.trace_stop"() : () -> ()
    %36 = vector.shape_cast %35 : vector<8x1x16xf32> to vector<8x16xf32>
    %cst_32 = arith.constant dense<0.000000e+00> : vector<8x32xf32>
    %37 = tpu.matmul %36, %9, %cst_32 {dimension_numbers = #tpu.dot_dimension_numbers<[1], [0], [0], [1], [0, 0, 1, 1], [], []>} : vector<8x16xf32>, vector<16x32xf32>, vector<8x32xf32> -> vector<8x32xf32>
    %38 = arith.addf %0, %37 : vector<8x32xf32>
    %39 = vector.broadcast %10 : vector<1x32xf32> to vector<8x32xf32>
    %40 = arith.addf %38, %39 : vector<8x32xf32>
    %cst_33 = arith.constant dense<0.000000e+00> : vector<8x16xf32>
    %41 = tpu.matmul %40, %5, %cst_33 {dimension_numbers = #tpu.dot_dimension_numbers<[1], [0], [0], [1], [0, 0, 1, 1], [], []>} : vector<8x32xf32>, vector<32x16xf32>, vector<8x16xf32> -> vector<8x16xf32>
    %42 = vector.broadcast %6 : vector<1x16xf32> to vector<8x16xf32>
    %43 = arith.addf %41, %42 : vector<8x16xf32>
    %cst_34 = arith.constant dense<0.000000e+00> : vector<8x16xf32>
    %44 = tpu.matmul %40, %7, %cst_34 {dimension_numbers = #tpu.dot_dimension_numbers<[1], [0], [0], [1], [0, 0, 1, 1], [], []>} : vector<8x32xf32>, vector<32x16xf32>, vector<8x16xf32> -> vector<8x16xf32>
    %45 = vector.broadcast %8 : vector<1x16xf32> to vector<8x16xf32>
    %46 = arith.addf %44, %45 : vector<8x16xf32>
    %47 = vector.shape_cast %43 : vector<8x16xf32> to vector<8x1x16xf32>
    "tpu.trace_start"() <{level = 10 : i32, message = "bte,bme->btm"}> : () -> ()
    %cst_35 = arith.constant dense<0.000000e+00> : vector<8x1x8xf32>
    %48 = tpu.matmul %47, %1, %cst_35 {dimension_numbers = #tpu.dot_dimension_numbers<[2], [2], [1], [1], [0, 0, 0, 1, 1, 1], [0], [0]>} : vector<8x1x16xf32>, vector<8x8x16xf32>, vector<8x1x8xf32> -> vector<8x1x8xf32>
    "tpu.trace_stop"() : () -> ()
    %49 = vector.shape_cast %46 : vector<8x16xf32> to vector<8x1x16xf32>
    "tpu.trace_start"() <{level = 10 : i32, message = "bte,bme->btm"}> : () -> ()
    %cst_36 = arith.constant dense<0.000000e+00> : vector<8x1x8xf32>
    %50 = tpu.matmul %49, %2, %cst_36 {dimension_numbers = #tpu.dot_dimension_numbers<[2], [2], [1], [1], [0, 0, 0, 1, 1, 1], [0], [0]>} : vector<8x1x16xf32>, vector<8x8x16xf32>, vector<8x1x8xf32> -> vector<8x1x8xf32>
    "tpu.trace_stop"() : () -> ()
    %51 = arith.addf %48, %50 : vector<8x1x8xf32>
    %cst_37 = arith.constant dense<0xFF800000> : vector<8x1xf32>
    %52 = vector.multi_reduction <maximumf>, %51, %cst_37 [2] : vector<8x1x8xf32> to vector<8x1xf32>
    %53 = vector.shape_cast %52 : vector<8x1xf32> to vector<8x1x1xf32>
    %54 = vector.broadcast %53 : vector<8x1x1xf32> to vector<8x1x8xf32>
    %55 = arith.subf %51, %54 : vector<8x1x8xf32>
    %56 = math.exp %55 : vector<8x1x8xf32>
    %57 = arith.mulf %56, %4 : vector<8x1x8xf32>
    %cst_38 = arith.constant dense<0.000000e+00> : vector<8x1xf32>
    %58 = vector.multi_reduction <add>, %57, %cst_38 [2] : vector<8x1x8xf32> to vector<8x1xf32>
    %59 = vector.shape_cast %58 : vector<8x1xf32> to vector<8x1x1xf32>
    %cst_39 = arith.constant 1.000000e-10 : f32
    %60 = vector.broadcast %cst_39 : f32 to vector<8x1x1xf32>
    %61 = arith.addf %59, %60 : vector<8x1x1xf32>
    %62 = tpu.reciprocal %61 {approx = true} : vector<8x1x1xf32> -> vector<8x1x1xf32>
    %63 = vector.broadcast %62 : vector<8x1x1xf32> to vector<8x1x8xf32>
    %64 = arith.mulf %57, %63 : vector<8x1x8xf32>
    "tpu.trace_start"() <{level = 10 : i32, message = "btm,bme->bte"}> : () -> ()
    %cst_40 = arith.constant dense<0.000000e+00> : vector<8x1x16xf32>
    %65 = tpu.matmul %64, %3, %cst_40 {dimension_numbers = #tpu.dot_dimension_numbers<[2], [1], [1], [2], [0, 0, 0, 1, 1, 2], [0], [0]>} : vector<8x1x8xf32>, vector<8x8x16xf32>, vector<8x1x16xf32> -> vector<8x1x16xf32>
    "tpu.trace_stop"() : () -> ()
    %66 = vector.shape_cast %65 : vector<8x1x16xf32> to vector<8x16xf32>
    %cst_41 = arith.constant dense<0.000000e+00> : vector<8x32xf32>
    %67 = tpu.matmul %66, %9, %cst_41 {dimension_numbers = #tpu.dot_dimension_numbers<[1], [0], [0], [1], [0, 0, 1, 1], [], []>} : vector<8x16xf32>, vector<16x32xf32>, vector<8x32xf32> -> vector<8x32xf32>
    %68 = arith.addf %40, %67 : vector<8x32xf32>
    %69 = vector.broadcast %10 : vector<1x32xf32> to vector<8x32xf32>
    %70 = arith.addf %68, %69 : vector<8x32xf32>
    %c0_42 = arith.constant 0 : index
    %c0_43 = arith.constant 0 : index
    %71 = vector.load %arg12[%c0_42, %c0_43] : memref<8x32xf32, #tpu.memory_space<vmem>>, vector<8x32xf32>
    tpu.vector_store %arg12[%c0_42, %c0_43], %70 {strides = array<i32>} : memref<8x32xf32, #tpu.memory_space<vmem>>, vector<8x32xf32>,
    return
  }
  func.func @transform_0(%arg0: i32) -> (i32, i32) {
    %c0_i32 = arith.constant 0 : i32
    %c0_i32_0 = arith.constant 0 : i32
    return %arg0, %c0_i32 : i32, i32
  }
  func.func @transform_1(%arg0: i32) -> (i32, i32, i32) {
    %c0_i32 = arith.constant 0 : i32
    %c0_i32_0 = arith.constant 0 : i32
    %c0_i32_1 = arith.constant 0 : i32
    return %arg0, %c0_i32, %c0_i32_0 : i32, i32, i32
  }
  func.func @transform_2(%arg0: i32) -> (i32, i32, i32) {
    %c0_i32 = arith.constant 0 : i32
    %c0_i32_0 = arith.constant 0 : i32
    %c0_i32_1 = arith.constant 0 : i32
    return %arg0, %c0_i32, %c0_i32_0 : i32, i32, i32
  }
  func.func @transform_3(%arg0: i32) -> (i32, i32, i32) {
    %c0_i32 = arith.constant 0 : i32
    %c0_i32_0 = arith.constant 0 : i32
    %c0_i32_1 = arith.constant 0 : i32
    return %arg0, %c0_i32, %c0_i32_0 : i32, i32, i32
  }
  func.func @transform_4(%arg0: i32) -> (i32, i32, i32) {
    %c0_i32 = arith.constant 0 : i32
    %c0_i32_0 = arith.constant 0 : i32
    %c0_i32_1 = arith.constant 0 : i32
    return %arg0, %c0_i32, %c0_i32_0 : i32, i32, i32
  }
  func.func @transform_5(%arg0: i32) -> (i32, i32) {
    %c0_i32 = arith.constant 0 : i32
    %c0_i32_0 = arith.constant 0 : i32
    %c0_i32_1 = arith.constant 0 : i32
    return %c0_i32, %c0_i32_0 : i32, i32
  }
  func.func @transform_6(%arg0: i32) -> (i32, i32) {
    %c0_i32 = arith.constant 0 : i32
    %c0_i32_0 = arith.constant 0 : i32
    %c0_i32_1 = arith.constant 0 : i32
    return %c0_i32, %c0_i32_0 : i32, i32
  }
  func.func @transform_7(%arg0: i32) -> (i32, i32) {
    %c0_i32 = arith.constant 0 : i32
    %c0_i32_0 = arith.constant 0 : i32
    %c0_i32_1 = arith.constant 0 : i32
    return %c0_i32, %c0_i32_0 : i32, i32
  }
  func.func @transform_8(%arg0: i32) -> (i32, i32) {
    %c0_i32 = arith.constant 0 : i32
    %c0_i32_0 = arith.constant 0 : i32
    %c0_i32_1 = arith.constant 0 : i32
    return %c0_i32, %c0_i32_0 : i32, i32
  }
  func.func @transform_9(%arg0: i32) -> (i32, i32) {
    %c0_i32 = arith.constant 0 : i32
    %c0_i32_0 = arith.constant 0 : i32
    %c0_i32_1 = arith.constant 0 : i32
    return %c0_i32, %c0_i32_0 : i32, i32
  }
  func.func @transform_10(%arg0: i32) -> (i32, i32) {
    %c0_i32 = arith.constant 0 : i32
    %c0_i32_0 = arith.constant 0 : i32
    %c0_i32_1 = arith.constant 0 : i32
    return %c0_i32, %c0_i32_0 : i32, i32
  }
  func.func @transform_11(%arg0: i32) -> (i32, i32) {
    %c0_i32 = arith.constant 0 : i32
    %c0_i32_0 = arith.constant 0 : i32
    return %arg0, %c0_i32 : i32, i32
  }
}

</mosaic_0001>

<bundles_post_ra>
// kernel: tpu_custom_call.1
= control target key start
LH: loop header
LB: loop body
LE: loop exit
PB: predicated region body
PF: predicated region fallthrough
CT: control target
= control target key end

     0   :  { %16 = vsyncpa [#allocation3], 0  ;;  %s6003_s0 = inlined_call_operand.hbm [shape: f32[8,32], index: 0, kind: input, shape index: {}]   ;;  %s6004_s1 = inlined_call_operand.vmem [shape: f32[8,8,16], index: 1, kind: input, shape index: {}]   ;;  %s6005_s2 = inlined_call_operand.hbm [shape: f32[8,8,16], index: 2, kind: input, shape index: {}]   ;;  %s6006_s3 = inlined_call_operand.hbm [shape: f32[8,8,16], index: 3, kind: input, shape index: {}]   ;;  %s6007_s4 = inlined_call_operand.hbm [shape: f32[8,1,8], index: 4, kind: input, shape index: {}]   ;;  %s6008_s5 = inlined_call_operand.vmem [shape: f32[32,16], index: 5, kind: input, shape index: {}]   ;;  %s6009_s6 = inlined_call_operand.vmem [shape: f32[1,16], index: 6, kind: input, shape index: {}]   ;;  %s6010_s7 = inlined_call_operand.vmem [shape: f32[32,16], index: 7, kind: input, shape index: {}]   ;;  %s6011_s8 = inlined_call_operand.vmem [shape: f32[1,16], index: 8, kind: input, shape index: {}]   ;;  %s6012_s9 = inlined_call_operand.vmem [shape: f32[16,32], index: 9, kind: input, shape index: {}]   ;;  %s6013_s10 = inlined_call_operand.vmem [shape: f32[1,32], index: 10, kind: input, shape index: {}]   ;;  %s6014_s11 = inlined_call_operand.hbm [shape: f32[8,32], index: 11, kind: output, shape index: {}]  }
   0x1   :  { %17 = vsyncpa [#allocation6], 0 }
   0x2   :  { %18 = vsyncpa [#allocation9], 0 }
   0x3   :  { %19 = vsyncpa [#allocation4], 0  ;;  %s5284_s17 = smov [#allocation5]  }
   0x4   :  { %s37_s18 = sshll.u32 %s5284_s17, 4  ;;  %s38_s18 = int_to_ptr.vmem [resolvable:$true] %s37_s18 }
   0x5   :  { %s5184_s19 = scalar_lea.vmem %s38_s18, 1024  ;;  %p5189_p1 = scmp.lt.s32.totalorder %s38_s18, %s38_s18 }
   0x6   :  { %p5185_p0 = scmp.ne.s32.totalorder %s38_s18, %s5184_s19  ;;  %p5190_p2 = scmp.lt.s32.totalorder %s5184_s19, %s5184_s19 }
   0x8   :  { %p5191_p3 = por %p5190_p2, %p5189_p1 }
   0xa   :  { %p5192_p4 = pnand %p5191_p3, %p5185_p0 }
   0xc   :  { %5195 = shalt.err (!%p5192_p4)
}
   0xd   :  { %s5285_s20 = smov 128   ;;  %s5286_s21 = smov 8  }
   0xe   :  { %43 = dma.hbm_to_vmem [thread:$0]  %s6005_s2, 1024, %s38_s18, [#allocation6], %s5285_s20, %s5285_s20, %s5286_s21  }
   0xf   :  { %s5287_s24 = smov [#allocation2]   ;;  %s5288_s26 = smov [#allocation7]  }
  0x10   :  { %s26_s25 = sshll.u32 %s5287_s24, 4  ;;  %s49_s27 = sshll.u32 %s5288_s26, 4  ;;  %s27_s25 = int_to_ptr.vmem [resolvable:$true] %s26_s25  ;;  %s50_s27 = int_to_ptr.vmem [resolvable:$true] %s49_s27 }
  0x11   :  { %s5204_s28 = scalar_lea.vmem %s27_s25, 128  ;;  %p5209_p6 = scmp.lt.s32.totalorder %s27_s25, %s27_s25 }
  0x12   :  { %p5205_p5 = scmp.ne.s32.totalorder %s27_s25, %s5204_s28  ;;  %p5210_p7 = scmp.lt.s32.totalorder %s5204_s28, %s5204_s28 }
  0x14   :  { %p5211_p8 = por %p5210_p7, %p5209_p6 }
  0x16   :  { %p5212_p9 = pnand %p5211_p8, %p5205_p5 }
  0x18   :  { %5215 = shalt.err (!%p5212_p9)
}
  0x19   :  { %29 = dma.hbm_to_vmem [thread:$0]  %s6003_s0, 128, %s27_s25, [#allocation3]  }
  0x1a   :  { %s5224_s12 = scalar_lea.vmem %s50_s27, 1024  ;;  %p5229_p11 = scmp.lt.s32.totalorder %s50_s27, %s50_s27 }
  0x1b   :  { %p5225_p10 = scmp.ne.s32.totalorder %s50_s27, %s5224_s12  ;;  %p5230_p12 = scmp.lt.s32.totalorder %s5224_s12, %s5224_s12 }
  0x1d   :  { %p5231_p13 = por %p5230_p12, %p5229_p11 }
  0x1f   :  { %p5232_p0 = pnand %p5231_p13, %p5225_p10 }
  0x21   :  { %5235 = shalt.err (!%p5232_p0)
}
  0x22   :  { %55 = dma.hbm_to_vmem [thread:$0]  %s6006_s3, 1024, %s50_s27, [#allocation6], %s5285_s20, %s5285_s20, %s5286_s21  }
  0x23   :  { %s5289_s14 = smov [#allocation8]  }
  0x24   :  { %s61_s15 = sshll.u32 %s5289_s14, 4  ;;  %s62_s15 = int_to_ptr.vmem [resolvable:$true] %s61_s15 }
  0x25   :  { %s5244_s16 = scalar_lea.vmem %s62_s15, 128  ;;  %p5249_p2 = scmp.lt.s32.totalorder %s62_s15, %s62_s15 }
  0x26   :  { %p5245_p1 = scmp.ne.s32.totalorder %s62_s15, %s5244_s16  ;;  %p5250_p3 = scmp.lt.s32.totalorder %s5244_s16, %s5244_s16 }
  0x28   :  { %p5251_p4 = por %p5250_p3, %p5249_p2 }
  0x2a   :  { %p5252_p5 = pnand %p5251_p4, %p5245_p1 }
  0x2c   :  { %5255 = shalt.err (!%p5252_p5)
}
  0x2d   :  { %s5290_s0 = smov 16   ;;  %s5291_s17 = smov 1  }
  0x2e   :  { %67 = dma.hbm_to_vmem [thread:$0]  %s6007_s4, 128, %s62_s15, [#allocation9], %s5290_s0, %s5290_s0, %s5291_s17  }
  0x2f   :  { %5276 = dma.done.wait [#allocation3], 128  }
  0x30   :  { %5277 = vsyncadd [#allocation3], 4294967168 }
  0x31   :  { %5278 = dma.done.wait [#allocation6], 2048  }
  0x32   :  { %5279 = vsyncadd [#allocation6], 4294965248 }
  0x33   :  { %5280 = dma.done.wait [#allocation9], 128  }
  0x34   :  { %5281 = vsyncadd [#allocation9], 4294967168  ;;  %v5292_v0 = vmov 0.0   ;;  %vm5293_vm0 = vmmov 0   ;;  %v5377_v1 = vld [vmem:[%s6010_s7 + $0x18] sm:$0xff]  ;;  %v5382_v2 = vld [vmem:[%s6010_s7 + $0x10] sm:$0xff]  ;;  %v299_v14 = vlaneseq }
  0x35   :  { %4813 = vmatprep.subr.mxu1 %v5292_v0  ;;  %4821 = vmatprep.mubr.msk.f32.mxu1 %vm5293_vm0, %v5292_v0  ;;  %v5388_v3 = vld [vmem:[%s6008_s5 + $0x18] sm:$0xff]  ;;  %v5394_v4 = vld [vmem:[%s6010_s7 + $0x8] sm:$0xff]  ;;  %v5400_v5 = vld [vmem:[%s6008_s5 + $0x10] sm:$0xff]  ;;  %vm144_vm1 = vcmask 261120   ;;  %vm394_vm2 = vcmask 130048   ;;  %vm1595_vm3 = vcmask 57344  }
  0x36   :  { %4802 = vmatprep.subr.mxu0 %v5292_v0  ;;  %4810 = vmatprep.mubr.msk.f32.mxu0 %vm5293_vm0, %v5292_v0  ;;  %v5407_v6 = vld [vmem:[%s6008_s5 + $0x8] sm:$0xff]  ;;  %v5413_v7 = vld [vmem:[%s6010_s7] sm:$0xff]  ;;  %v5444_v11 = vld [vmem:[#allocation5 + $0x8] sm:$0xff]  ;;  %v5294_v12 = vmov 1966171168   ;;  %v300_v16 = vshrl.u32 %v299_v14, 7 }
  0x37   :  { %4814 = vmatpush3.msra.mxu1 %v5377_v1  ;;  %4803 = vmatpush3.msra.mxu0 %v5388_v3  ;;  %v5417_v8 = vld [vmem:[#allocation2] sm:$0xff]  ;;  %v5440_v10 = vld [vmem:[#allocation5] sm:$0xff]  ;;  %v297_v13 = vunpack.c.l.s4 %v5294_v12  ;;  %v5460_v28 = vld [vmem:[#allocation5 + $0x10] sm:$0xff]  ;;  %vm1700_vm4 = vcmask 64512   ;;  %vm2294_vm5 = vcmask 1041409   ;;  %vm2297_vm6 = vcmask 1042434  }
  0x38   :  { %4815 = vmatprep.subr.mxu1 %v5292_v0  ;;  %4804 = vmatprep.subr.mxu0 %v5292_v0  ;;  %v5423_v9 = vld [vmem:[%s6008_s5] sm:$0xff]  ;;  %v5478_v34 = vld [vmem:[#allocation5 + $0x20] sm:$0xff]  ;;  %v5487_v38 = vld [vmem:[#allocation5 + $0x28] sm:$0xff]  ;;  %vm2300_vm7 = vcmask 1043459   ;;  %vm2303_vm8 = vcmask 1044484   ;;  %vm2306_vm9 = vcmask 1045509  }
  0x39   :  { %4816 = vmatpush3.msra.mxu1 %v5382_v2  ;;  %4805 = vmatpush3.msra.mxu0 %v5400_v5  ;;  %v298_v15 = vunpack.c.0.s8 %v297_v13  ;;  %v5453_v17 = vld [vmem:[%s6011_s8] ss:$0 sm:$0xff]  ;;  %v5497_v41 = vld [vmem:[#allocation5 + $0x30] sm:$0xff]  ;;  %v5529_v50 = vld [vmem:[%s6004_s1 + $0x8] sm:$0xff]  ;;  %vm2309_vm10 = vcmask 1046534   ;;  %vm2312_vm11 = vcmask 1047559  }
  0x3a   :  { %4817 = vmatprep.subr.mxu1 %v5292_v0  ;;  %4806 = vmatprep.subr.mxu0 %v5292_v0  ;;  %v5465_v29 = vld [vmem:[%s6009_s6] ss:$0 sm:$0xff]  ;;  %v5541_v52 = vld [vmem:[%s6004_s1 + $0x10] sm:$0xff]  ;;  %v5553_v54 = vld [vmem:[%s6004_s1 + $0x18] sm:$0xff] }
  0x3b   :  { %4818 = vmatpush3.msra.mxu1 %v5394_v4  ;;  %4807 = vmatpush3.msra.mxu0 %v5407_v6  ;;  %v5455_v18 = vsub.s32 %v298_v15, %v300_v16  ;;  %v5470_v32 = vld [vmem:[#allocation5 + $0x18] sm:$0xff]  ;;  %v5575_v59 = vld [vmem:[%s6004_s1 + $0x28] sm:$0xff]  ;;  %v5587_v61 = vld [vmem:[%s6004_s1 + $0x30] sm:$0xff] }
  0x3c   :  { %4819 = vmatprep.subr.mxu1 %v5292_v0  ;;  %4808 = vmatprep.subr.mxu0 %v5292_v0  ;;  %v5506_v43 = vld [vmem:[#allocation5 + $0x38] sm:$0xff]  ;;  %v5599_v63 = vld [vmem:[%s6004_s1 + $0x38] sm:$0xff] }
  0x3d   :  { %4820 = vmatpush3.msra.mxu1 %v5413_v7  ;;  %4809 = vmatpush3.msra.mxu0 %v5423_v9  ;;  %v5517_v46 = vld [vmem:[%s6004_s1] sm:$0xff] }
  0x3e   :  { %4822 = vmatmul.mubr.msk.f32.vlgmr.msra.gmra.mxu1 %vm144_vm1, %v5417_v8  ;;  %4811 = vmatmul.mubr.msk.f32.vlgmr.msra.gmra.mxu0 %vm144_vm1, %v5417_v8  ;;  %v5564_v56 = vld [vmem:[%s6004_s1 + $0x20] sm:$0xff] }
  0x3f   :  { %4824 = vmatprep.subr.mxu0 %v5292_v0  ;;  %4829 = vmatprep.subr.mxu1 %v5292_v0 }
  0x40   :  { %4826 = vmatprep.mubr.msk.f32.mxu0 %vm5293_vm0, %v5292_v0  ;;  %4831 = vmatprep.mubr.msk.f32.mxu1 %vm5293_vm0, %v5292_v0 }
  0x41   :  { %4825 = vmatpush3.xpose.msk.msra.mxu0 %vm394_vm2, %v5440_v10  ;;  %4830 = vmatpush3.xpose.msk.msra.mxu1 %vm394_vm2, %v5444_v11 }
  0x42   :  { %4834 = vmatprep.subr.mxu0 %v5292_v0  ;;  %4839 = vmatprep.subr.mxu1 %v5292_v0 }
  0xfe   :  { %v290_v19 = vpop.f32.mrf.mxu1  ;;  %v214_v21 = vpop.f32.mrf.mxu0 }
  0xff   :  { %v291_v20 = vadd.f32 %v5453_v17, %v290_v19  ;;  %v215_v35 = vadd.f32 %v5465_v29, %v214_v21 }
 0x100   :  { %v4823_v22 = vpop.f32.mrf.mxu1  ;;  %v4812_v25 = vpop.f32.mrf.mxu0 }
 0x101   :  { %v345_v23 = vcombine.high %v291_v20, %v291_v20  ;;  %v352_v24 = vrot.slane %v291_v20, %v5455_v18  ;;  %v302_v40 = vrot.slane %v215_v35, %v5455_v18  ;;  %v295_v48 = vcombine.high %v215_v35, %v215_v35 }
 0x103   :  { %v360_v26 = vcombine.high %v352_v24, %v352_v24  ;;  %v368_v27 = vrot.slane %v352_v24, %v5455_v18  ;;  %v359_v30 = vrot.slane %v345_v23, %v5455_v18  ;;  %v310_v45 = vcombine.high %v302_v40, %v302_v40 }
 0x104   :  { %v318_v49 = vrot.slane %v302_v40, %v5455_v18  ;;  %v309_v53 = vrot.slane %v295_v48, %v5455_v18 }
 0x105   :  { %v382_v31 = vrot.slane %v360_v26, %v5455_v18  ;;  %4827 = vmatmul.mubr.msk.f32.vlgmr.msra.gmra.mxu0 %vm394_vm2, %v368_v27  ;;  %v390_v33 = vcombine.high %v368_v27, %v368_v27  ;;  %v361_v36 = vcombine.high %v359_v30, %v359_v30  ;;  %v375_v39 = vrot.slane %v359_v30, %v5455_v18 }
 0x106   :  { %4835 = vmatpush3.xpose.msk.msra.mxu0 %vm394_vm2, %v5460_v28  ;;  %4836 = vmatprep.mubr.msk.f32.mxu0 %vm5293_vm0, %v5292_v0  ;;  %v332_v51 = vrot.slane %v310_v45, %v5455_v18  ;;  %v340_v55 = vcombine.high %v318_v49, %v318_v49  ;;  %v311_v57 = vcombine.high %v309_v53, %v309_v53 }
 0x107   :  { %4832 = vmatmul.mubr.msk.f32.vlgmr.msra.gmra.mxu1 %vm394_vm2, %v382_v31  ;;  %4844 = vmatprep.subr.mxu0 %v5292_v0  ;;  %v392_v37 = vcombine.high %v382_v31, %v382_v31  ;;  %v389_v42 = vrot.slane %v361_v36, %v5455_v18  ;;  %v391_v44 = vcombine.high %v375_v39, %v375_v39 }
 0x108   :  { %4840 = vmatpush3.xpose.msk.msra.mxu1 %vm394_vm2, %v5470_v32  ;;  %4841 = vmatprep.mubr.msk.f32.mxu1 %vm5293_vm0, %v5292_v0  ;;  %v342_v58 = vcombine.high %v332_v51, %v332_v51  ;;  %v325_v60 = vrot.slane %v309_v53, %v5455_v18  ;;  %v339_v62 = vrot.slane %v311_v57, %v5455_v18 }
 0x109   :  { %4837 = vmatmul.mubr.msk.f32.vlgmr.msra.gmra.mxu0 %vm394_vm2, %v390_v33  ;;  %4849 = vmatprep.subr.mxu1 %v5292_v0  ;;  %v393_v47 = vcombine.high %v389_v42, %v389_v42 }
 0x10a   :  { %4845 = vmatpush3.xpose.msk.msra.mxu0 %vm394_vm2, %v5478_v34  ;;  %4846 = vmatprep.mubr.msk.f32.mxu0 %vm5293_vm0, %v5292_v0  ;;  %v341_v12 = vcombine.high %v325_v60, %v325_v60  ;;  %v343_v13 = vcombine.high %v339_v62, %v339_v62 }
 0x10b   :  { %4842 = vmatmul.mubr.msk.f32.vlgmr.msra.gmra.mxu1 %vm394_vm2, %v392_v37  ;;  %4854 = vmatprep.subr.mxu0 %v5292_v0 }
 0x10c   :  { %4850 = vmatpush3.xpose.msk.msra.mxu1 %vm394_vm2, %v5487_v38  ;;  %4851 = vmatprep.mubr.msk.f32.mxu1 %vm5293_vm0, %v5292_v0 }
 0x10d   :  { %4847 = vmatmul.mubr.msk.f32.vlgmr.msra.gmra.mxu0 %vm394_vm2, %v375_v39  ;;  %4859 = vmatprep.subr.mxu1 %v5292_v0 }
 0x10e   :  { %4855 = vmatpush3.xpose.msk.msra.mxu0 %vm394_vm2, %v5497_v41  ;;  %4856 = vmatprep.mubr.msk.f32.mxu0 %vm5293_vm0, %v5292_v0 }
 0x10f   :  { %4852 = vmatmul.mubr.msk.f32.vlgmr.msra.gmra.mxu1 %vm394_vm2, %v389_v42  ;;  %4864 = vmatprep.subr.mxu0 %v5292_v0 }
 0x110   :  { %4860 = vmatpush3.xpose.msk.msra.mxu1 %vm394_vm2, %v5506_v43  ;;  %4861 = vmatprep.mubr.msk.f32.mxu1 %vm5293_vm0, %v5292_v0 }
 0x111   :  { %4857 = vmatmul.mubr.msk.f32.vlgmr.msra.gmra.mxu0 %vm394_vm2, %v391_v44  ;;  %4869 = vmatprep.subr.mxu1 %v5292_v0 }
 0x112   :  { %4865 = vmatpush3.xpose.msk.msra.mxu0 %vm394_vm2, %v5517_v46  ;;  %4866 = vmatprep.mubr.msk.f32.mxu0 %vm5293_vm0, %v5292_v0 }
 0x113   :  { %4862 = vmatmul.mubr.msk.f32.vlgmr.msra.gmra.mxu1 %vm394_vm2, %v393_v47  ;;  %4874 = vmatprep.subr.mxu0 %v5292_v0 }
 0x114   :  { %4870 = vmatpush3.xpose.msk.msra.mxu1 %vm394_vm2, %v5529_v50  ;;  %4871 = vmatprep.mubr.msk.f32.mxu1 %vm5293_vm0, %v5292_v0 }
 0x115   :  { %4867 = vmatmul.mubr.msk.f32.vlgmr.msra.gmra.mxu0 %vm394_vm2, %v318_v49  ;;  %4879 = vmatprep.subr.mxu1 %v5292_v0 }
 0x116   :  { %4875 = vmatpush3.xpose.msk.msra.mxu0 %vm394_vm2, %v5541_v52  ;;  %4876 = vmatprep.mubr.msk.f32.mxu0 %vm5293_vm0, %v5292_v0 }
 0x117   :  { %4872 = vmatmul.mubr.msk.f32.vlgmr.msra.gmra.mxu1 %vm394_vm2, %v332_v51  ;;  %4884 = vmatprep.subr.mxu0 %v5292_v0 }
 0x118   :  { %4880 = vmatpush3.xpose.msk.msra.mxu1 %vm394_vm2, %v5553_v54  ;;  %4881 = vmatprep.mubr.msk.f32.mxu1 %vm5293_vm0, %v5292_v0 }
 0x119   :  { %4877 = vmatmul.mubr.msk.f32.vlgmr.msra.gmra.mxu0 %vm394_vm2, %v340_v55  ;;  %4889 = vmatprep.subr.mxu1 %v5292_v0 }
 0x11a   :  { %4885 = vmatpush3.xpose.msk.msra.mxu0 %vm394_vm2, %v5564_v56  ;;  %4886 = vmatprep.mubr.msk.f32.mxu0 %vm5293_vm0, %v5292_v0 }
 0x11b   :  { %4882 = vmatmul.mubr.msk.f32.vlgmr.msra.gmra.mxu1 %vm394_vm2, %v342_v58  ;;  %4894 = vmatprep.subr.mxu0 %v5292_v0 }
 0x11c   :  { %4890 = vmatpush3.xpose.msk.msra.mxu1 %vm394_vm2, %v5575_v59  ;;  %4891 = vmatprep.mubr.msk.f32.mxu1 %vm5293_vm0, %v5292_v0 }
 0x11d   :  { %4887 = vmatmul.mubr.msk.f32.vlgmr.msra.gmra.mxu0 %vm394_vm2, %v325_v60  ;;  %4899 = vmatprep.subr.mxu1 %v5292_v0 }
 0x11e   :  { %4895 = vmatpush3.xpose.msk.msra.mxu0 %vm394_vm2, %v5587_v61  ;;  %4896 = vmatprep.mubr.msk.f32.mxu0 %vm5293_vm0, %v5292_v0 }
 0x11f   :  { %4892 = vmatmul.mubr.msk.f32.vlgmr.msra.gmra.mxu1 %vm394_vm2, %v339_v62  ;;  %4904 = vmatprep.subr.mxu0 %v5292_v0 }
 0x120   :  { %4900 = vmatpush3.xpose.msk.msra.mxu1 %vm394_vm2, %v5599_v63  ;;  %4901 = vmatprep.mubr.msk.f32.mxu1 %vm5293_vm0, %v5292_v0 }
 0x121   :  { %4897 = vmatmul.mubr.msk.f32.vlgmr.msra.gmra.mxu0 %vm394_vm2, %v341_v12  ;;  %4909 = vmatprep.subr.mxu1 %v5292_v0 }
 0x122   :  { %4906 = vmatprep.mubr.msk.f32.mxu0 %vm5293_vm0, %v5292_v0 }
 0x123   :  { %4902 = vmatmul.mubr.msk.f32.vlgmr.msra.gmra.mxu1 %vm394_vm2, %v343_v13 }
 0x124   :  { %4911 = vmatprep.mubr.msk.f32.mxu1 %vm5293_vm0, %v5292_v0 }
 0x1c5   :  { %v466_v14 = vpop.f32.mrf.mxu0 }
 0x1c7   :  { %v4828_v15 = vpop.f32.mrf.mxu0  ;;  %v541_v16 = vpop.f32.mrf.mxu1 }
 0x1c9   :  { %v4833_v19 = vpop.f32.mrf.mxu1  ;;  %v616_v20 = vpop.f32.mrf.mxu0 }
 0x1cb   :  { %v4838_v21 = vpop.f32.mrf.mxu0  ;;  %v691_v22 = vpop.f32.mrf.mxu1 }
 0x1cd   :  { %v4843_v23 = vpop.f32.mrf.mxu1  ;;  %v766_v24 = vpop.f32.mrf.mxu0 }
 0x1cf   :  { %v4848_v25 = vpop.f32.mrf.mxu0  ;;  %v841_v26 = vpop.f32.mrf.mxu1 }
 0x1d1   :  { %v4853_v27 = vpop.f32.mrf.mxu1  ;;  %v916_v30 = vpop.f32.mrf.mxu0 }
 0x1d3   :  { %v4858_v31 = vpop.f32.mrf.mxu0  ;;  %v991_v33 = vpop.f32.mrf.mxu1 }
 0x1d5   :  { %v4863_v35 = vpop.f32.mrf.mxu1  ;;  %v1066_v36 = vpop.f32.mrf.mxu0 }
 0x1d6   :  { %v1067_v37 = vadd.f32 %v1066_v36, %v466_v14 }
 0x1d7   :  { %v4868_v39 = vpop.f32.mrf.mxu0  ;;  %v1141_v40 = vpop.f32.mrf.mxu1 }
 0x1d8   :  { %v1142_v42 = vadd.f32 %v1141_v40, %v541_v16  ;;  %v1596_v44 = vsel %vm1595_vm3, %v1067_v37, -inf }
 0x1d9   :  { %v4873_v45 = vpop.f32.mrf.mxu1  ;;  %1597 = vmax.xlane.f32.xlu0 %v1596_v44  ;;  %v1216_v47 = vpop.f32.mrf.mxu0 }
 0x1da   :  { %v1217_v48 = vadd.f32 %v1216_v47, %v616_v20  ;;  %v1599_v55 = vsel %vm1595_vm3, %v1142_v42, -inf }
 0x1db   :  { %v4878_v49 = vpop.f32.mrf.mxu0  ;;  %v1291_v51 = vpop.f32.mrf.mxu1 }
 0x1dc   :  { %v1292_v53 = vadd.f32 %v1291_v51, %v691_v22  ;;  %v1602_v57 = vsel %vm1595_vm3, %v1217_v48, -inf }
 0x1dd   :  { %v4883_v58 = vpop.f32.mrf.mxu1  ;;  %1600 = vmax.xlane.f32.xlu0 %v1599_v55  ;;  %1603 = vmax.xlane.f32.xlu1 %v1602_v57  ;;  %v1366_v60 = vpop.f32.mrf.mxu0 }
 0x1de   :  { %v1367_v62 = vadd.f32 %v1366_v60, %v766_v24  ;;  %v1605_v15 = vsel %vm1595_vm3, %v1292_v53, -inf }
 0x1df   :  { %v4888_v12 = vpop.f32.mrf.mxu0  ;;  %v1441_v13 = vpop.f32.mrf.mxu1 }
 0x1e0   :  { %v1442_v14 = vadd.f32 %v1441_v13, %v841_v26  ;;  %v1608_v16 = vsel %vm1595_vm3, %v1367_v62, -inf }
 0x1e1   :  { %v4893_v19 = vpop.f32.mrf.mxu1  ;;  %1606 = vmax.xlane.f32.xlu1 %v1605_v15  ;;  %1609 = vmax.xlane.f32.xlu0 %v1608_v16  ;;  %v1516_v20 = vpop.f32.mrf.mxu0 }
 0x1e2   :  { %v1517_v21 = vadd.f32 %v1516_v20, %v916_v30  ;;  %v1611_v27 = vsel %vm1595_vm3, %v1442_v14, -inf }
 0x1e3   :  { %v4898_v22 = vpop.f32.mrf.mxu0  ;;  %v1591_v23 = vpop.f32.mrf.mxu1 }
 0x1e4   :  { %v1592_v25 = vadd.f32 %v1591_v23, %v991_v33  ;;  %v1614_v31 = vsel %vm1595_vm3, %v1517_v21, -inf  ;;  %v5631_v23 = vld [vmem:[#allocation8 + $0x1] sm:$0x1] }
 0x1e5   :  { %v4903_v24 = vpop.f32.mrf.mxu1  ;;  %1612 = vmax.xlane.f32.xlu1 %v1611_v27  ;;  %1615 = vmax.xlane.f32.xlu0 %v1614_v31 }
 0x1e6   :  { %v1617_v26 = vsel %vm1595_vm3, %v1592_v25, -inf }
 0x1e9   :  { %1618 = vmax.xlane.f32.xlu1 %v1617_v26  ;;  %v5643_v26 = vld [vmem:[#allocation8 + $0x3] sm:$0x1] }
 0x262   :  { %v1598_v35 = vpop.xlane.xlu0 %1597 }
 0x263   :  { %v1620_v36 = vsub.f32 %v1067_v37, %v1598_v35 }
 0x265   :  { %v1628_v39 = vmul.f32 1.442695, %v1620_v36  ;;  %v5647_v36 = vld [vmem:[#allocation8 + $0x4] sm:$0x1] }
 0x266   :  { %v1601_v40 = vpop.xlane.xlu0 %1600  ;;  %v1604_v44 = vpop.xlane.xlu1 %1603 }
 0x267   :  { %5112 = vpow2.f32 %v1628_v39  ;;  %v1621_v30 = vsub.f32 %v1142_v42, %v1601_v40  ;;  %v1622_v45 = vsub.f32 %v1217_v48, %v1604_v44  ;;  %v5626_v48 = vld [vmem:[#allocation8] sm:$0x1] }
 0x269   :  { %v1630_v47 = vmul.f32 1.442695, %v1621_v30  ;;  %v1632_v33 = vmul.f32 1.442695, %v1622_v45 }
 0x26a   :  { %v1607_v49 = vpop.xlane.xlu1 %1606  ;;  %v1610_v51 = vpop.xlane.xlu0 %1609 }
 0x26b   :  { %5114 = vpow2.f32 %v1630_v47  ;;  %v1623_v55 = vsub.f32 %v1292_v53, %v1607_v49  ;;  %v1624_v57 = vsub.f32 %v1367_v62, %v1610_v51  ;;  %v5657_v47 = vld [vmem:[#allocation8 + $0x5] sm:$0x1]  ;;  %v5661_v49 = vld [vmem:[#allocation8 + $0x6] sm:$0x1] }
 0x26c   :  { %5116 = vpow2.f32 %v1632_v33 }
 0x26d   :  { %v1634_v58 = vmul.f32 1.442695, %v1623_v55  ;;  %v1636_v60 = vmul.f32 1.442695, %v1624_v57 }
 0x26e   :  { %v1613_v12 = vpop.xlane.xlu1 %1612  ;;  %v1616_v13 = vpop.xlane.xlu0 %1615 }
 0x26f   :  { %5118 = vpow2.f32 %v1634_v58  ;;  %v1625_v37 = vsub.f32 %v1442_v14, %v1613_v12  ;;  %v1626_v15 = vsub.f32 %v1517_v21, %v1616_v13  ;;  %v5635_v21 = vld [vmem:[#allocation8 + $0x2] sm:$0x1]  ;;  %v5671_v12 = vld [vmem:[#allocation8 + $0x7] sm:$0x1] }
 0x270   :  { %5120 = vpow2.f32 %v1636_v60 }
 0x271   :  { %v1638_v16 = vmul.f32 1.442695, %v1625_v37  ;;  %v1640_v19 = vmul.f32 1.442695, %v1626_v15 }
 0x272   :  { %v1619_v42 = vpop.xlane.xlu1 %1618 }
 0x273   :  { %5122 = vpow2.f32 %v1638_v16  ;;  %v1627_v20 = vsub.f32 %v1592_v25, %v1619_v42  ;;  %v5682_v42 = vld [vmem:[#allocation7] sm:$0xff] }
 0x274   :  { %v5113_v22 = vpop.eup %5112  ;;  %5124 = vpow2.f32 %v1640_v19  ;;  %4905 = vmatpush3.msra.mxu0 %v5682_v42 }
 0x275   :  { %v1642_v53 = vmul.f32 1.442695, %v1627_v20  ;;  %v5629_v62 = vmul.f32 %v5113_v22, %v5626_v48  ;;  %v5685_v20 = vld [vmem:[#allocation7 + $0x8] sm:$0xff]  ;;  %4914 = vmatprep.subr.mxu0 %v5292_v0 }
 0x276   :  { %4910 = vmatpush3.msra.mxu1 %v5685_v20 }
 0x277   :  { %5126 = vpow2.f32 %v1642_v53  ;;  %v1652_v14 = vsel %vm1595_vm3, %v5629_v62, 0.0  ;;  %4919 = vmatprep.subr.mxu1 %v5292_v0 }
 0x278   :  { %v5115_v27 = vpop.eup %5114  ;;  %1653 = vadd.xlane.f32.xlu0 %v1652_v14 }
 0x279   :  { %v5117_v31 = vpop.eup %5116  ;;  %v5638_v24 = vmul.f32 %v5115_v27, %v5631_v23 }
 0x27a   :  { %v5641_v25 = vmul.f32 %v5117_v31, %v5635_v21 }
 0x27b   :  { %v1655_v35 = vsel %vm1595_vm3, %v5638_v24, 0.0 }
 0x27c   :  { %v5119_v39 = vpop.eup %5118  ;;  %1656 = vadd.xlane.f32.xlu1 %v1655_v35  ;;  %v1658_v40 = vsel %vm1595_vm3, %v5641_v25, 0.0 }
 0x27d   :  { %v5121_v44 = vpop.eup %5120  ;;  %1659 = vadd.xlane.f32.xlu0 %v1658_v40  ;;  %v5652_v30 = vmul.f32 %v5119_v39, %v5643_v26 }
 0x27e   :  { %v5655_v45 = vmul.f32 %v5121_v44, %v5647_v36 }
 0x27f   :  { %v1661_v33 = vsel %vm1595_vm3, %v5652_v30, 0.0 }
 0x280   :  { %v5123_v51 = vpop.eup %5122  ;;  %1662 = vadd.xlane.f32.xlu1 %v1661_v33  ;;  %v1664_v55 = vsel %vm1595_vm3, %v5655_v45, 0.0 }
 0x281   :  { %v5125_v57 = vpop.eup %5124  ;;  %1665 = vadd.xlane.f32.xlu0 %v1664_v55  ;;  %v5666_v58 = vmul.f32 %v5123_v51, %v5657_v47 }
 0x282   :  { %v5669_v60 = vmul.f32 %v5125_v57, %v5661_v49 }
 0x283   :  { %v1667_v13 = vsel %vm1595_vm3, %v5666_v58, 0.0 }
 0x284   :  { %v5127_v37 = vpop.eup %5126  ;;  %1668 = vadd.xlane.f32.xlu1 %v1667_v13  ;;  %v1670_v15 = vsel %vm1595_vm3, %v5669_v60, 0.0 }
 0x285   :  { %1671 = vadd.xlane.f32.xlu0 %v1670_v15  ;;  %v5678_v16 = vmul.f32 %v5127_v37, %v5671_v12 }
 0x287   :  { %v1673_v19 = vsel %vm1595_vm3, %v5678_v16, 0.0 }
 0x288   :  { %1674 = vadd.xlane.f32.xlu1 %v1673_v19 }
 0x301   :  { %v1654_v22 = vpop.xlane.xlu0 %1653 }
 0x302   :  { %v1676_v53 = vadd.f32 1e-10, %v1654_v22 }
 0x304   :  { %5128 = vrcp.f32 %v1676_v53  ;;  %v5691_v53 = vld [vmem:[#allocation7 + $0x10] sm:$0xff] }
 0x305   :  { %v1657_v14 = vpop.xlane.xlu1 %1656 }
 0x306   :  { %v1677_v27 = vadd.f32 1e-10, %v1657_v14  ;;  %v1660_v31 = vpop.xlane.xlu0 %1659 }
 0x307   :  { %v1678_v35 = vadd.f32 1e-10, %v1660_v31 }
 0x308   :  { %5130 = vrcp.f32 %v1677_v27 }
 0x309   :  { %5132 = vrcp.f32 %v1678_v35  ;;  %v1663_v39 = vpop.xlane.xlu1 %1662  ;;  %v5698_v35 = vld [vmem:[#allocation7 + $0x18] sm:$0xff] }
 0x30a   :  { %v1679_v40 = vadd.f32 1e-10, %v1663_v39  ;;  %v1666_v44 = vpop.xlane.xlu0 %1665  ;;  %v5702_v39 = vld [vmem:[#allocation7 + $0x20] sm:$0xff] }
 0x30b   :  { %v1680_v33 = vadd.f32 1e-10, %v1666_v44 }
 0x30c   :  { %5134 = vrcp.f32 %v1679_v40 }
 0x30d   :  { %5136 = vrcp.f32 %v1680_v33  ;;  %v1669_v51 = vpop.xlane.xlu1 %1668  ;;  %v5711_v33 = vld [vmem:[#allocation7 + $0x28] sm:$0xff] }
 0x30e   :  { %v1681_v55 = vadd.f32 1e-10, %v1669_v51  ;;  %v1672_v57 = vpop.xlane.xlu0 %1671  ;;  %v5717_v51 = vld [vmem:[#allocation7 + $0x30] sm:$0xff] }
 0x30f   :  { %v1682_v13 = vadd.f32 1e-10, %v1672_v57 }
 0x310   :  { %5138 = vrcp.f32 %v1681_v55 }
 0x311   :  { %v5129_v37 = vpop.eup %5128  ;;  %5140 = vrcp.f32 %v1682_v13  ;;  %v1675_v15 = vpop.xlane.xlu1 %1674 }
 0x312   :  { %v1683_v19 = vadd.f32 1e-10, %v1675_v15  ;;  %v1692_v22 = vmul.f32 %v5129_v37, %v5629_v62 }
 0x314   :  { %5142 = vrcp.f32 %v1683_v19  ;;  %4907 = vmatmul.mubr.msk.f32.vlgmr.msra.gmra.mxu0 %vm1700_vm4, %v1692_v22 }
 0x315   :  { %v5131_v14 = vpop.eup %5130  ;;  %4915 = vmatpush3.msra.mxu0 %v5691_v53  ;;  %4916 = vmatprep.mubr.msk.f32.mxu0 %vm5293_vm0, %v5292_v0 }
 0x316   :  { %v5133_v27 = vpop.eup %5132  ;;  %v1693_v31 = vmul.f32 %v5131_v14, %v5638_v24  ;;  %4924 = vmatprep.subr.mxu0 %v5292_v0 }
 0x317   :  { %v1694_v62 = vmul.f32 %v5133_v27, %v5641_v25 }
 0x318   :  { %4912 = vmatmul.mubr.msk.f32.vlgmr.msra.gmra.mxu1 %vm1700_vm4, %v1693_v31 }
 0x319   :  { %v5135_v40 = vpop.eup %5134  ;;  %4917 = vmatmul.mubr.msk.f32.vlgmr.msra.gmra.mxu0 %vm1700_vm4, %v1694_v62  ;;  %4920 = vmatpush3.msra.mxu1 %v5698_v35 }
 0x31a   :  { %v5137_v44 = vpop.eup %5136  ;;  %4921 = vmatprep.mubr.msk.f32.mxu1 %vm5293_vm0, %v5292_v0  ;;  %4925 = vmatpush3.msra.mxu0 %v5702_v39  ;;  %v1695_v24 = vmul.f32 %v5135_v40, %v5652_v30 }
 0x31b   :  { %4926 = vmatprep.mubr.msk.f32.mxu0 %vm5293_vm0, %v5292_v0  ;;  %4929 = vmatprep.subr.mxu1 %v5292_v0  ;;  %v1696_v25 = vmul.f32 %v5137_v44, %v5655_v45  ;;  %v5727_v45 = vld [vmem:[#allocation7 + $0x38] sm:$0xff] }
 0x31c   :  { %4922 = vmatmul.mubr.msk.f32.vlgmr.msra.gmra.mxu1 %vm1700_vm4, %v1695_v24  ;;  %4934 = vmatprep.subr.mxu0 %v5292_v0 }
 0x31d   :  { %v5139_v55 = vpop.eup %5138  ;;  %4927 = vmatmul.mubr.msk.f32.vlgmr.msra.gmra.mxu0 %vm1700_vm4, %v1696_v25  ;;  %4930 = vmatpush3.msra.mxu1 %v5711_v33 }
 0x31e   :  { %v5141_v30 = vpop.eup %5140  ;;  %4931 = vmatprep.mubr.msk.f32.mxu1 %vm5293_vm0, %v5292_v0  ;;  %4935 = vmatpush3.msra.mxu0 %v5717_v51  ;;  %v1697_v57 = vmul.f32 %v5139_v55, %v5666_v58 }
 0x31f   :  { %4936 = vmatprep.mubr.msk.f32.mxu0 %vm5293_vm0, %v5292_v0  ;;  %4939 = vmatprep.subr.mxu1 %v5292_v0  ;;  %v1698_v13 = vmul.f32 %v5141_v30, %v5669_v60 }
 0x320   :  { %4932 = vmatmul.mubr.msk.f32.vlgmr.msra.gmra.mxu1 %vm1700_vm4, %v1697_v57  ;;  %4944 = vmatprep.subr.mxu0 %v5292_v0 }
 0x321   :  { %v5143_v37 = vpop.eup %5142  ;;  %4937 = vmatmul.mubr.msk.f32.vlgmr.msra.gmra.mxu0 %vm1700_vm4, %v1698_v13  ;;  %4940 = vmatpush3.msra.mxu1 %v5727_v45 }
 0x322   :  { %4941 = vmatprep.mubr.msk.f32.mxu1 %vm5293_vm0, %v5292_v0  ;;  %v1699_v58 = vmul.f32 %v5143_v37, %v5678_v16  ;;  %4948 = vmatprep.mubr.msk.f32.mxu0 %vm5293_vm0, %v5292_v0 }
 0x323   :  { %4951 = vmatprep.subr.mxu1 %v5292_v0 }
 0x324   :  { %4942 = vmatmul.mubr.msk.f32.vlgmr.msra.gmra.mxu1 %vm1700_vm4, %v1699_v58 }
 0x325   :  { %4952 = vmatpush3.msra.mxu1 %v5388_v3  ;;  %4959 = vmatprep.mubr.msk.f32.mxu1 %vm5293_vm0, %v5292_v0  ;;  %v5757_v3 = vld [vmem:[%s6012_s9 + $0x8] sm:$0xff] }
 0x326   :  { %4953 = vmatprep.subr.mxu1 %v5292_v0  ;;  %4945 = vmatpush3.msra.mxu0 %v5757_v3 }
 0x327   :  { %4954 = vmatpush3.msra.mxu1 %v5400_v5  ;;  %4946 = vmatprep.subr.mxu0 %v5292_v0  ;;  %v5764_v5 = vld [vmem:[%s6012_s9] sm:$0xff] }
 0x328   :  { %4955 = vmatprep.subr.mxu1 %v5292_v0  ;;  %4947 = vmatpush3.msra.mxu0 %v5764_v5 }
 0x329   :  { %4956 = vmatpush3.msra.mxu1 %v5407_v6  ;;  %4962 = vmatprep.subr.mxu0 %v5292_v0 }
 0x32a   :  { %4957 = vmatprep.subr.mxu1 %v5292_v0 }
 0x32b   :  { %4958 = vmatpush3.msra.mxu1 %v5423_v9 }
 0x32c   :  { %4973 = vmatprep.subr.mxu1 %v5292_v0 }
 0x3d4   :  { %v1770_v6 = vpop.f32.mrf.mxu0 }
 0x3d6   :  { %v4908_v9 = vpop.f32.mrf.mxu0 }
 0x3d8   :  { %v1843_v60 = vpop.f32.mrf.mxu1 }
 0x3d9   :  { %v2293_v16 = vrot.slane %v1843_v60, 7  ;;  %v1916_v15 = vpop.f32.mrf.mxu0 }
 0x3da   :  { %v2296_v19 = vrot.slane %v1916_v15, 6  ;;  %v4913_v22 = vpop.f32.mrf.mxu1 }
 0x3db   :  { %v2295_v14 = vsel %vm2294_vm5, %v2293_v16, %v1770_v6  ;;  %v4918_v27 = vpop.f32.mrf.mxu0 }
 0x3dc   :  { %v1989_v31 = vpop.f32.mrf.mxu1  ;;  %v2298_v44 = vsel %vm2297_vm6, %v2296_v19, %v2295_v14 }
 0x3dd   :  { %v2299_v62 = vrot.slane %v1989_v31, 5  ;;  %v2062_v40 = vpop.f32.mrf.mxu0 }
 0x3de   :  { %v2302_v24 = vrot.slane %v2062_v40, 4  ;;  %v4923_v25 = vpop.f32.mrf.mxu1 }
 0x3df   :  { %v2301_v55 = vsel %vm2300_vm7, %v2299_v62, %v2298_v44  ;;  %v4928_v30 = vpop.f32.mrf.mxu0 }
 0x3e0   :  { %v2135_v57 = vpop.f32.mrf.mxu1  ;;  %v2304_v58 = vsel %vm2303_vm8, %v2302_v24, %v2301_v55 }
 0x3e1   :  { %v2305_v13 = vrot.slane %v2135_v57, 3  ;;  %v2208_v37 = vpop.f32.mrf.mxu0 }
 0x3e2   :  { %v2308_v6 = vrot.slane %v2208_v37, 2  ;;  %v4933_v9 = vpop.f32.mrf.mxu1 }
 0x3e3   :  { %v2307_v60 = vsel %vm2306_vm9, %v2305_v13, %v2304_v58  ;;  %v4938_v16 = vpop.f32.mrf.mxu0 }
 0x3e4   :  { %v2281_v15 = vpop.f32.mrf.mxu1  ;;  %v2310_v22 = vsel %vm2309_vm10, %v2308_v6, %v2307_v60 }
 0x3e5   :  { %v2311_v19 = vrot.slane %v2281_v15, 1 }
 0x3e6   :  { %v4943_v14 = vpop.f32.mrf.mxu1 }
 0x3e7   :  { %v2313_v27 = vsel %vm2312_vm11, %v2311_v19, %v2310_v22 }
 0x3e8   :  { %4949 = vmatmul.mubr.msk.f32.vlgmr.msra.gmra.mxu0 %vm394_vm2, %v2313_v27 }
 0x3e9   :  { %4963 = vmatpush3.msra.mxu0 %v5377_v1  ;;  %4970 = vmatprep.mubr.msk.f32.mxu0 %vm5293_vm0, %v5292_v0  ;;  %v5789_v1 = vld [vmem:[%s6013_s10] ss:$0 sm:$0xff]  ;;  %s5295_s10 = smov [#allocation10]  }
 0x3ea   :  { %4964 = vmatprep.subr.mxu0 %v5292_v0  ;;  %s4580_s12 = sshll.u32 %s5295_s10, 4  ;;  %s4581_s12 = int_to_ptr.vmem [resolvable:$true] %s4580_s12 }
 0x3eb   :  { %4965 = vmatpush3.msra.mxu0 %v5382_v2  ;;  %s5256_s2 = scalar_lea.vmem %s4581_s12, 128  ;;  %p5261_p7 = scmp.lt.s32.totalorder %s4581_s12, %s4581_s12 }
 0x3ec   :  { %4966 = vmatprep.subr.mxu0 %v5292_v0  ;;  %p5257_p6 = scmp.ne.s32.totalorder %s4581_s12, %s5256_s2  ;;  %p5262_p8 = scmp.lt.s32.totalorder %s5256_s2, %s5256_s2 }
 0x3ed   :  { %4967 = vmatpush3.msra.mxu0 %v5394_v4 }
 0x3ee   :  { %4968 = vmatprep.subr.mxu0 %v5292_v0  ;;  %p5263_p9 = por %p5262_p8, %p5261_p7 }
 0x3ef   :  { %4969 = vmatpush3.msra.mxu0 %v5413_v7 }
 0x3f0   :  { %4978 = vmatprep.subr.mxu0 %v5292_v0  ;;  %p5264_p10 = pnand %p5263_p9, %p5257_p6 }
 0x4a8   :  { %v2382_v31 = vpop.f32.mrf.mxu0 }
 0x4a9   :  { %v2386_v62 = vadd.f32 %v2382_v31, %v5417_v8 }
 0x4aa   :  { %v4950_v40 = vpop.f32.mrf.mxu0 }
 0x4ab   :  { %v5793_v2 = vadd.f32 %v5789_v1, %v2386_v62 }
 0x4ad   :  { %4960 = vmatmul.mubr.msk.f32.vlgmr.msra.gmra.mxu1 %vm144_vm1, %v5793_v2  ;;  %4971 = vmatmul.mubr.msk.f32.vlgmr.msra.gmra.mxu0 %vm144_vm1, %v5793_v2 }
 0x4ae   :  { %4974 = vmatpush3.xpose.msk.msra.mxu1 %vm394_vm2, %v5440_v10  ;;  %4979 = vmatpush3.xpose.msk.msra.mxu0 %vm394_vm2, %v5444_v11 }
 0x4af   :  { %4975 = vmatprep.mubr.msk.f32.mxu1 %vm5293_vm0, %v5292_v0  ;;  %4983 = vmatprep.subr.mxu1 %v5292_v0 }
 0x4b0   :  { %4980 = vmatprep.mubr.msk.f32.mxu0 %vm5293_vm0, %v5292_v0  ;;  %4988 = vmatprep.subr.mxu0 %v5292_v0 }
 0x56d   :  { %v2463_v4 = vpop.f32.mrf.mxu1  ;;  %v2533_v7 = vpop.f32.mrf.mxu0 }
 0x56e   :  { %v2534_v8 = vadd.f32 %v5453_v17, %v2533_v7  ;;  %v2464_v13 = vadd.f32 %v5465_v29, %v2463_v4 }
 0x56f   :  { %v4961_v44 = vpop.f32.mrf.mxu1  ;;  %v4972_v24 = vpop.f32.mrf.mxu0 }
 0x570   :  { %v2595_v10 = vrot.slane %v2534_v8, %v5455_v18  ;;  %v2588_v25 = vcombine.high %v2534_v8, %v2534_v8  ;;  %v2545_v29 = vrot.slane %v2464_v13, %v5455_v18 }
 0x572   :  { %v2603_v11 = vcombine.high %v2595_v10, %v2595_v10  ;;  %v2611_v55 = vrot.slane %v2595_v10, %v5455_v18  ;;  %v2602_v30 = vrot.slane %v2588_v25, %v5455_v18  ;;  %v2553_v6 = vcombine.high %v2545_v29, %v2545_v29 }
 0x574   :  { %v2625_v57 = vrot.slane %v2603_v11, %v5455_v18  ;;  %4976 = vmatmul.mubr.msk.f32.vlgmr.msra.gmra.mxu1 %vm394_vm2, %v2611_v55  ;;  %v2633_v17 = vcombine.high %v2611_v55, %v2611_v55  ;;  %v2604_v37 = vcombine.high %v2602_v30, %v2602_v30  ;;  %v2575_v60 = vrot.slane %v2553_v6, %v5455_v18 }
 0x575   :  { %4984 = vmatpush3.xpose.msk.msra.mxu1 %vm394_vm2, %v5460_v28  ;;  %4985 = vmatprep.mubr.msk.f32.mxu1 %vm5293_vm0, %v5292_v0  ;;  %v2618_v28 = vrot.slane %v2602_v30, %v5455_v18 }
 0x576   :  { %4981 = vmatmul.mubr.msk.f32.vlgmr.msra.gmra.mxu0 %vm394_vm2, %v2625_v57  ;;  %4993 = vmatprep.subr.mxu1 %v5292_v0  ;;  %v2635_v58 = vcombine.high %v2625_v57, %v2625_v57  ;;  %v2585_v16 = vcombine.high %v2575_v60, %v2575_v60 }
 0x577   :  { %4989 = vmatpush3.xpose.msk.msra.mxu0 %vm394_vm2, %v5470_v32  ;;  %4990 = vmatprep.mubr.msk.f32.mxu0 %vm5293_vm0, %v5292_v0  ;;  %v2632_v32 = vrot.slane %v2604_v37, %v5455_v18 }
 0x578   :  { %4986 = vmatmul.mubr.msk.f32.vlgmr.msra.gmra.mxu1 %vm394_vm2, %v2633_v17  ;;  %4998 = vmatprep.subr.mxu0 %v5292_v0 }
 0x579   :  { %4994 = vmatpush3.xpose.msk.msra.mxu1 %vm394_vm2, %v5478_v34  ;;  %4995 = vmatprep.mubr.msk.f32.mxu1 %vm5293_vm0, %v5292_v0  ;;  %v2634_v34 = vcombine.high %v2618_v28, %v2618_v28  ;;  %v2636_v9 = vcombine.high %v2632_v32, %v2632_v32 }
 0x57a   :  { %4991 = vmatmul.mubr.msk.f32.vlgmr.msra.gmra.mxu0 %vm394_vm2, %v2635_v58  ;;  %5003 = vmatprep.subr.mxu1 %v5292_v0 }
 0x57b   :  { %4999 = vmatpush3.xpose.msk.msra.mxu0 %vm394_vm2, %v5487_v38  ;;  %5000 = vmatprep.mubr.msk.f32.mxu0 %vm5293_vm0, %v5292_v0  ;;  %v2538_v38 = vcombine.high %v2464_v13, %v2464_v13 }
 0x57c   :  { %4996 = vmatmul.mubr.msk.f32.vlgmr.msra.gmra.mxu1 %vm394_vm2, %v2618_v28  ;;  %5008 = vmatprep.subr.mxu0 %v5292_v0 }
 0x57d   :  { %5004 = vmatpush3.xpose.msk.msra.mxu1 %vm394_vm2, %v5497_v41  ;;  %5005 = vmatprep.mubr.msk.f32.mxu1 %vm5293_vm0, %v5292_v0  ;;  %v2561_v41 = vrot.slane %v2545_v29, %v5455_v18 }
 0x57e   :  { %5001 = vmatmul.mubr.msk.f32.vlgmr.msra.gmra.mxu0 %vm394_vm2, %v2632_v32  ;;  %5013 = vmatprep.subr.mxu1 %v5292_v0 }
 0x57f   :  { %5009 = vmatpush3.xpose.msk.msra.mxu0 %vm394_vm2, %v5506_v43  ;;  %5010 = vmatprep.mubr.msk.f32.mxu0 %vm5293_vm0, %v5292_v0  ;;  %v2552_v43 = vrot.slane %v2538_v38, %v5455_v18 }
 0x580   :  { %5006 = vmatmul.mubr.msk.f32.vlgmr.msra.gmra.mxu1 %vm394_vm2, %v2634_v34  ;;  %5018 = vmatprep.subr.mxu0 %v5292_v0 }
 0x581   :  { %5014 = vmatpush3.xpose.msk.msra.mxu1 %vm394_vm2, %v5517_v46  ;;  %5015 = vmatprep.mubr.msk.f32.mxu1 %vm5293_vm0, %v5292_v0  ;;  %v2583_v46 = vcombine.high %v2561_v41, %v2561_v41 }
 0x582   :  { %5011 = vmatmul.mubr.msk.f32.vlgmr.msra.gmra.mxu0 %vm394_vm2, %v2636_v9  ;;  %5023 = vmatprep.subr.mxu1 %v5292_v0 }
 0x583   :  { %5019 = vmatpush3.xpose.msk.msra.mxu0 %vm394_vm2, %v5529_v50  ;;  %5020 = vmatprep.mubr.msk.f32.mxu0 %vm5293_vm0, %v5292_v0  ;;  %v2554_v50 = vcombine.high %v2552_v43, %v2552_v43 }
 0x584   :  { %5016 = vmatmul.mubr.msk.f32.vlgmr.msra.gmra.mxu1 %vm394_vm2, %v2561_v41  ;;  %5028 = vmatprep.subr.mxu0 %v5292_v0 }
 0x585   :  { %5024 = vmatpush3.xpose.msk.msra.mxu1 %vm394_vm2, %v5541_v52  ;;  %5025 = vmatprep.mubr.msk.f32.mxu1 %vm5293_vm0, %v5292_v0  ;;  %v2568_v52 = vrot.slane %v2552_v43, %v5455_v18 }
 0x586   :  { %5021 = vmatmul.mubr.msk.f32.vlgmr.msra.gmra.mxu0 %vm394_vm2, %v2575_v60  ;;  %5033 = vmatprep.subr.mxu1 %v5292_v0 }
 0x587   :  { %5029 = vmatpush3.xpose.msk.msra.mxu0 %vm394_vm2, %v5553_v54  ;;  %5030 = vmatprep.mubr.msk.f32.mxu0 %vm5293_vm0, %v5292_v0  ;;  %v2582_v54 = vrot.slane %v2554_v50, %v5455_v18 }
 0x588   :  { %5026 = vmatmul.mubr.msk.f32.vlgmr.msra.gmra.mxu1 %vm394_vm2, %v2583_v46  ;;  %5038 = vmatprep.subr.mxu0 %v5292_v0 }
 0x589   :  { %5034 = vmatpush3.xpose.msk.msra.mxu1 %vm394_vm2, %v5564_v56  ;;  %5035 = vmatprep.mubr.msk.f32.mxu1 %vm5293_vm0, %v5292_v0  ;;  %v2584_v56 = vcombine.high %v2568_v52, %v2568_v52  ;;  %v2586_v18 = vcombine.high %v2582_v54, %v2582_v54 }
 0x58a   :  { %5031 = vmatmul.mubr.msk.f32.vlgmr.msra.gmra.mxu0 %vm394_vm2, %v2585_v16  ;;  %5043 = vmatprep.subr.mxu1 %v5292_v0 }
 0x58b   :  { %5039 = vmatpush3.xpose.msk.msra.mxu0 %vm394_vm2, %v5575_v59  ;;  %5040 = vmatprep.mubr.msk.f32.mxu0 %vm5293_vm0, %v5292_v0 }
 0x58c   :  { %5036 = vmatmul.mubr.msk.f32.vlgmr.msra.gmra.mxu1 %vm394_vm2, %v2568_v52  ;;  %5048 = vmatprep.subr.mxu0 %v5292_v0 }
 0x58d   :  { %5044 = vmatpush3.xpose.msk.msra.mxu1 %vm394_vm2, %v5587_v61  ;;  %5045 = vmatprep.mubr.msk.f32.mxu1 %vm5293_vm0, %v5292_v0 }
 0x58e   :  { %5041 = vmatmul.mubr.msk.f32.vlgmr.msra.gmra.mxu0 %vm394_vm2, %v2582_v54  ;;  %5053 = vmatprep.subr.mxu1 %v5292_v0 }
 0x58f   :  { %5049 = vmatpush3.xpose.msk.msra.mxu0 %vm394_vm2, %v5599_v63  ;;  %5050 = vmatprep.mubr.msk.f32.mxu0 %vm5293_vm0, %v5292_v0 }
 0x590   :  { %5046 = vmatmul.mubr.msk.f32.vlgmr.msra.gmra.mxu1 %vm394_vm2, %v2584_v56  ;;  %5058 = vmatprep.subr.mxu0 %v5292_v0 }
 0x591   :  { %5054 = vmatpush3.msra.mxu1 %v5682_v42  ;;  %5055 = vmatprep.mubr.msk.f32.mxu1 %vm5293_vm0, %v5292_v0 }
 0x592   :  { %5051 = vmatmul.mubr.msk.f32.vlgmr.msra.gmra.mxu0 %vm394_vm2, %v2586_v18  ;;  %5063 = vmatprep.subr.mxu1 %v5292_v0 }
 0x593   :  { %5059 = vmatpush3.msra.mxu0 %v5685_v20  ;;  %5060 = vmatprep.mubr.msk.f32.mxu0 %vm5293_vm0, %v5292_v0 }
 0x594   :  { %5068 = vmatprep.subr.mxu0 %v5292_v0 }
 0x634   :  { %v2705_v59 = vpop.f32.mrf.mxu1 }
 0x636   :  { %v4977_v61 = vpop.f32.mrf.mxu1  ;;  %v2777_v63 = vpop.f32.mrf.mxu0 }
 0x638   :  { %v4982_v15 = vpop.f32.mrf.mxu0  ;;  %v2849_v19 = vpop.f32.mrf.mxu1 }
 0x63a   :  { %v4987_v42 = vpop.f32.mrf.mxu1  ;;  %v2921_v22 = vpop.f32.mrf.mxu0 }
 0x63c   :  { %v4992_v14 = vpop.f32.mrf.mxu0  ;;  %v2993_v27 = vpop.f32.mrf.mxu1 }
 0x63e   :  { %v4997_v31 = vpop.f32.mrf.mxu1  ;;  %v3065_v62 = vpop.f32.mrf.mxu0 }
 0x640   :  { %v5002_v40 = vpop.f32.mrf.mxu0  ;;  %v3137_v4 = vpop.f32.mrf.mxu1 }
 0x642   :  { %v5007_v7 = vpop.f32.mrf.mxu1  ;;  %v3209_v20 = vpop.f32.mrf.mxu0 }
 0x644   :  { %v5012_v8 = vpop.f32.mrf.mxu0  ;;  %v3281_v44 = vpop.f32.mrf.mxu1 }
 0x645   :  { %v3282_v24 = vadd.f32 %v3281_v44, %v2705_v59 }
 0x646   :  { %v5017_v10 = vpop.f32.mrf.mxu1  ;;  %v3353_v25 = vpop.f32.mrf.mxu0 }
 0x647   :  { %v3354_v11 = vadd.f32 %v3353_v25, %v2777_v63  ;;  %v3789_v55 = vsel %vm1595_vm3, %v3282_v24, -inf }
 0x648   :  { %3790 = vmax.xlane.f32.xlu0 %v3789_v55  ;;  %v5022_v30 = vpop.f32.mrf.mxu0  ;;  %v3425_v57 = vpop.f32.mrf.mxu1 }
 0x649   :  { %v3426_v17 = vadd.f32 %v3425_v57, %v2849_v19  ;;  %v3792_v13 = vsel %vm1595_vm3, %v3354_v11, -inf }
 0x64a   :  { %v5027_v37 = vpop.f32.mrf.mxu1  ;;  %3793 = vmax.xlane.f32.xlu1 %v3792_v13  ;;  %v3497_v58 = vpop.f32.mrf.mxu0 }
 0x64b   :  { %v3498_v28 = vadd.f32 %v3497_v58, %v2921_v22  ;;  %v3795_v29 = vsel %vm1595_vm3, %v3426_v17, -inf }
 0x64c   :  { %3796 = vmax.xlane.f32.xlu0 %v3795_v29  ;;  %v5032_v32 = vpop.f32.mrf.mxu0  ;;  %v3569_v34 = vpop.f32.mrf.mxu1 }
 0x64d   :  { %v3570_v38 = vadd.f32 %v3569_v34, %v2993_v27  ;;  %v3798_v6 = vsel %vm1595_vm3, %v3498_v28, -inf }
 0x64e   :  { %v5037_v9 = vpop.f32.mrf.mxu1  ;;  %3799 = vmax.xlane.f32.xlu1 %v3798_v6  ;;  %v3641_v41 = vpop.f32.mrf.mxu0 }
 0x64f   :  { %v3642_v43 = vadd.f32 %v3641_v41, %v3065_v62  ;;  %v3801_v60 = vsel %vm1595_vm3, %v3570_v38, -inf }
 0x650   :  { %3802 = vmax.xlane.f32.xlu0 %v3801_v60  ;;  %v5042_v46 = vpop.f32.mrf.mxu0  ;;  %v3713_v50 = vpop.f32.mrf.mxu1 }
 0x651   :  { %v3714_v16 = vadd.f32 %v3713_v50, %v3137_v4  ;;  %v3804_v52 = vsel %vm1595_vm3, %v3642_v43, -inf }
 0x652   :  { %v5047_v54 = vpop.f32.mrf.mxu1  ;;  %3805 = vmax.xlane.f32.xlu1 %v3804_v52  ;;  %v3785_v56 = vpop.f32.mrf.mxu0 }
 0x653   :  { %v3786_v18 = vadd.f32 %v3785_v56, %v3209_v20  ;;  %v3807_v59 = vsel %vm1595_vm3, %v3714_v16, -inf }
 0x654   :  { %3808 = vmax.xlane.f32.xlu0 %v3807_v59  ;;  %v5052_v61 = vpop.f32.mrf.mxu0 }
 0x655   :  { %v3810_v63 = vsel %vm1595_vm3, %v3786_v18, -inf }
 0x656   :  { %3811 = vmax.xlane.f32.xlu1 %v3810_v63 }
 0x6d1   :  { %v3791_v15 = vpop.xlane.xlu0 %3790 }
 0x6d2   :  { %v3813_v19 = vsub.f32 %v3282_v24, %v3791_v15 }
 0x6d3   :  { %v3794_v42 = vpop.xlane.xlu1 %3793 }
 0x6d4   :  { %v3821_v22 = vmul.f32 1.442695, %v3813_v19  ;;  %v3814_v14 = vsub.f32 %v3354_v11, %v3794_v42 }
 0x6d5   :  { %v3797_v27 = vpop.xlane.xlu0 %3796 }
 0x6d6   :  { %5144 = vpow2.f32 %v3821_v22  ;;  %v3823_v31 = vmul.f32 1.442695, %v3814_v14  ;;  %v3815_v62 = vsub.f32 %v3426_v17, %v3797_v27 }
 0x6d7   :  { %v3800_v40 = vpop.xlane.xlu1 %3799 }
 0x6d8   :  { %5146 = vpow2.f32 %v3823_v31  ;;  %v3825_v4 = vmul.f32 1.442695, %v3815_v62  ;;  %v3816_v7 = vsub.f32 %v3498_v28, %v3800_v40 }
 0x6d9   :  { %v3803_v20 = vpop.xlane.xlu0 %3802 }
 0x6da   :  { %5148 = vpow2.f32 %v3825_v4  ;;  %v3827_v8 = vmul.f32 1.442695, %v3816_v7  ;;  %v3817_v44 = vsub.f32 %v3570_v38, %v3803_v20 }
 0x6db   :  { %v3806_v10 = vpop.xlane.xlu1 %3805 }
 0x6dc   :  { %5150 = vpow2.f32 %v3827_v8  ;;  %v3829_v25 = vmul.f32 1.442695, %v3817_v44  ;;  %v3818_v55 = vsub.f32 %v3642_v43, %v3806_v10 }
 0x6dd   :  { %v3809_v24 = vpop.xlane.xlu0 %3808 }
 0x6de   :  { %5152 = vpow2.f32 %v3829_v25  ;;  %v3831_v30 = vmul.f32 1.442695, %v3818_v55  ;;  %v3819_v11 = vsub.f32 %v3714_v16, %v3809_v24 }
 0x6df   :  { %v3812_v57 = vpop.xlane.xlu1 %3811 }
 0x6e0   :  { %5154 = vpow2.f32 %v3831_v30  ;;  %v3833_v13 = vmul.f32 1.442695, %v3819_v11  ;;  %v3820_v17 = vsub.f32 %v3786_v18, %v3812_v57 }
 0x6e2   :  { %5156 = vpow2.f32 %v3833_v13  ;;  %v3835_v37 = vmul.f32 1.442695, %v3820_v17 }
 0x6e3   :  { %v5145_v58 = vpop.eup %5144 }
 0x6e4   :  { %5158 = vpow2.f32 %v3835_v37  ;;  %v3837_v28 = vmul.f32 %v5145_v58, %v5626_v48 }
 0x6e5   :  { %v5147_v29 = vpop.eup %5146 }
 0x6e6   :  { %v3845_v32 = vsel %vm1595_vm3, %v3837_v28, 0.0  ;;  %v3838_v34 = vmul.f32 %v5147_v29, %v5631_v23 }
 0x6e7   :  { %v5149_v38 = vpop.eup %5148  ;;  %3846 = vadd.xlane.f32.xlu0 %v3845_v32 }
 0x6e8   :  { %v3848_v6 = vsel %vm1595_vm3, %v3838_v34, 0.0  ;;  %v3839_v9 = vmul.f32 %v5149_v38, %v5635_v21 }
 0x6e9   :  { %v5151_v41 = vpop.eup %5150  ;;  %3849 = vadd.xlane.f32.xlu1 %v3848_v6 }
 0x6ea   :  { %v3851_v43 = vsel %vm1595_vm3, %v3839_v9, 0.0  ;;  %v3840_v60 = vmul.f32 %v5151_v41, %v5643_v26 }
 0x6eb   :  { %v5153_v46 = vpop.eup %5152  ;;  %3852 = vadd.xlane.f32.xlu0 %v3851_v43 }
 0x6ec   :  { %v3854_v48 = vsel %vm1595_vm3, %v3840_v60, 0.0  ;;  %v3841_v50 = vmul.f32 %v5153_v46, %v5647_v36 }
 0x6ed   :  { %v5155_v16 = vpop.eup %5154  ;;  %3855 = vadd.xlane.f32.xlu1 %v3854_v48 }
 0x6ee   :  { %v3857_v23 = vsel %vm1595_vm3, %v3841_v50, 0.0  ;;  %v5936_v52 = vmul.f32 %v5155_v16, %v5657_v47 }
 0x6ef   :  { %v5157_v21 = vpop.eup %5156  ;;  %3858 = vadd.xlane.f32.xlu0 %v3857_v23 }
 0x6f0   :  { %v3860_v54 = vsel %vm1595_vm3, %v5936_v52, 0.0  ;;  %v5941_v26 = vmul.f32 %v5157_v21, %v5661_v49 }
 0x6f1   :  { %v5159_v56 = vpop.eup %5158  ;;  %3861 = vadd.xlane.f32.xlu1 %v3860_v54 }
 0x6f2   :  { %v3863_v36 = vsel %vm1595_vm3, %v5941_v26, 0.0  ;;  %v5946_v18 = vmul.f32 %v5159_v56, %v5671_v12 }
 0x6f3   :  { %3864 = vadd.xlane.f32.xlu0 %v3863_v36 }
 0x6f4   :  { %v3866_v47 = vsel %vm1595_vm3, %v5946_v18, 0.0 }
 0x6f5   :  { %3867 = vadd.xlane.f32.xlu1 %v3866_v47 }
 0x770   :  { %v3847_v59 = vpop.xlane.xlu0 %3846 }
 0x771   :  { %v3869_v61 = vadd.f32 1e-10, %v3847_v59 }
 0x772   :  { %v3850_v63 = vpop.xlane.xlu1 %3849 }
 0x773   :  { %5160 = vrcp.f32 %v3869_v61  ;;  %v3870_v15 = vadd.f32 1e-10, %v3850_v63 }
 0x774   :  { %v3853_v49 = vpop.xlane.xlu0 %3852 }
 0x775   :  { %5162 = vrcp.f32 %v3870_v15  ;;  %v3871_v19 = vadd.f32 1e-10, %v3853_v49 }
 0x776   :  { %v3856_v42 = vpop.xlane.xlu1 %3855 }
 0x777   :  { %5164 = vrcp.f32 %v3871_v19  ;;  %v3872_v22 = vadd.f32 1e-10, %v3856_v42 }
 0x778   :  { %v3859_v14 = vpop.xlane.xlu0 %3858 }
 0x779   :  { %5166 = vrcp.f32 %v3872_v22  ;;  %v3873_v12 = vadd.f32 1e-10, %v3859_v14 }
 0x77a   :  { %v3862_v27 = vpop.xlane.xlu1 %3861 }
 0x77b   :  { %5168 = vrcp.f32 %v3873_v12  ;;  %v3874_v31 = vadd.f32 1e-10, %v3862_v27 }
 0x77c   :  { %v3865_v62 = vpop.xlane.xlu0 %3864 }
 0x77d   :  { %5170 = vrcp.f32 %v3874_v31  ;;  %v3875_v40 = vadd.f32 1e-10, %v3865_v62 }
 0x77e   :  { %v3868_v4 = vpop.xlane.xlu1 %3867 }
 0x77f   :  { %5172 = vrcp.f32 %v3875_v40  ;;  %v3876_v7 = vadd.f32 1e-10, %v3868_v4 }
 0x780   :  { %v5161_v20 = vpop.eup %5160 }
 0x781   :  { %5174 = vrcp.f32 %v3876_v7  ;;  %v3885_v8 = vmul.f32 %v5161_v20, %v3837_v28 }
 0x782   :  { %v5163_v44 = vpop.eup %5162 }
 0x783   :  { %5056 = vmatmul.mubr.msk.f32.vlgmr.msra.gmra.mxu1 %vm1700_vm4, %v3885_v8  ;;  %v3886_v10 = vmul.f32 %v5163_v44, %v3838_v34 }
 0x784   :  { %v5165_v25 = vpop.eup %5164  ;;  %5064 = vmatpush3.msra.mxu1 %v5691_v53  ;;  %5065 = vmatprep.mubr.msk.f32.mxu1 %vm5293_vm0, %v5292_v0 }
 0x785   :  { %5061 = vmatmul.mubr.msk.f32.vlgmr.msra.gmra.mxu0 %vm1700_vm4, %v3886_v10  ;;  %v3887_v55 = vmul.f32 %v5165_v25, %v3839_v9  ;;  %5073 = vmatprep.subr.mxu1 %v5292_v0 }
 0x786   :  { %v5167_v24 = vpop.eup %5166  ;;  %5069 = vmatpush3.msra.mxu0 %v5698_v35  ;;  %5070 = vmatprep.mubr.msk.f32.mxu0 %vm5293_vm0, %v5292_v0 }
 0x787   :  { %5066 = vmatmul.mubr.msk.f32.vlgmr.msra.gmra.mxu1 %vm1700_vm4, %v3887_v55  ;;  %5078 = vmatprep.subr.mxu0 %v5292_v0  ;;  %v3888_v30 = vmul.f32 %v5167_v24, %v3840_v60 }
 0x788   :  { %v5169_v53 = vpop.eup %5168  ;;  %5074 = vmatpush3.msra.mxu1 %v5702_v39  ;;  %5075 = vmatprep.mubr.msk.f32.mxu1 %vm5293_vm0, %v5292_v0 }
 0x789   :  { %5071 = vmatmul.mubr.msk.f32.vlgmr.msra.gmra.mxu0 %vm1700_vm4, %v3888_v30  ;;  %v3889_v11 = vmul.f32 %v5169_v53, %v3841_v50  ;;  %5083 = vmatprep.subr.mxu1 %v5292_v0 }
 0x78a   :  { %v5171_v35 = vpop.eup %5170  ;;  %5079 = vmatpush3.msra.mxu0 %v5711_v33  ;;  %5080 = vmatprep.mubr.msk.f32.mxu0 %vm5293_vm0, %v5292_v0 }
 0x78b   :  { %5076 = vmatmul.mubr.msk.f32.vlgmr.msra.gmra.mxu1 %vm1700_vm4, %v3889_v11  ;;  %5088 = vmatprep.subr.mxu0 %v5292_v0  ;;  %v3890_v39 = vmul.f32 %v5171_v35, %v5936_v52 }
 0x78c   :  { %v5173_v57 = vpop.eup %5172  ;;  %5084 = vmatpush3.msra.mxu1 %v5717_v51  ;;  %5085 = vmatprep.mubr.msk.f32.mxu1 %vm5293_vm0, %v5292_v0 }
 0x78d   :  { %5081 = vmatmul.mubr.msk.f32.vlgmr.msra.gmra.mxu0 %vm1700_vm4, %v3890_v39  ;;  %v3891_v13 = vmul.f32 %v5173_v57, %v5941_v26  ;;  %5093 = vmatprep.subr.mxu1 %v5292_v0 }
 0x78e   :  { %v5175_v33 = vpop.eup %5174  ;;  %5089 = vmatpush3.msra.mxu0 %v5727_v45  ;;  %5090 = vmatprep.mubr.msk.f32.mxu0 %vm5293_vm0, %v5292_v0 }
 0x78f   :  { %5086 = vmatmul.mubr.msk.f32.vlgmr.msra.gmra.mxu1 %vm1700_vm4, %v3891_v13  ;;  %v3892_v17 = vmul.f32 %v5175_v33, %v5946_v18 }
 0x790   :  { %5094 = vmatpush3.msra.mxu1 %v5757_v3  ;;  %5097 = vmatprep.mubr.msk.f32.mxu1 %vm5293_vm0, %v5292_v0 }
 0x791   :  { %5091 = vmatmul.mubr.msk.f32.vlgmr.msra.gmra.mxu0 %vm1700_vm4, %v3892_v17  ;;  %5095 = vmatprep.subr.mxu1 %v5292_v0 }
 0x792   :  { %5096 = vmatpush3.msra.mxu1 %v5764_v5 }
 0x843   :  { %v3962_v51 = vpop.f32.mrf.mxu1 }
 0x845   :  { %v5057_v45 = vpop.f32.mrf.mxu1  ;;  %v4035_v37 = vpop.f32.mrf.mxu0 }
 0x846   :  { %v4485_v58 = vrot.slane %v4035_v37, 7 }
 0x847   :  { %v5062_v28 = vpop.f32.mrf.mxu0  ;;  %v4108_v29 = vpop.f32.mrf.mxu1 }
 0x848   :  { %v4486_v32 = vsel %vm2294_vm5, %v4485_v58, %v3962_v51  ;;  %v4487_v34 = vrot.slane %v4108_v29, 6 }
 0x849   :  { %v5067_v38 = vpop.f32.mrf.mxu1  ;;  %v4181_v3 = vpop.f32.mrf.mxu0 }
 0x84a   :  { %v4488_v6 = vsel %vm2297_vm6, %v4487_v34, %v4486_v32  ;;  %v4489_v9 = vrot.slane %v4181_v3, 5 }
 0x84b   :  { %v5072_v41 = vpop.f32.mrf.mxu0  ;;  %v4254_v43 = vpop.f32.mrf.mxu1 }
 0x84c   :  { %v4490_v0 = vsel %vm2300_vm7, %v4489_v9, %v4488_v6  ;;  %v4491_v60 = vrot.slane %v4254_v43, 4 }
 0x84d   :  { %v5077_v5 = vpop.f32.mrf.mxu1  ;;  %v4327_v46 = vpop.f32.mrf.mxu0 }
 0x84e   :  { %v4492_v48 = vsel %vm2303_vm8, %v4491_v60, %v4490_v0  ;;  %v4493_v50 = vrot.slane %v4327_v46, 3 }
 0x84f   :  { %v5082_v16 = vpop.f32.mrf.mxu0  ;;  %v4400_v23 = vpop.f32.mrf.mxu1 }
 0x850   :  { %v4494_v52 = vsel %vm2306_vm9, %v4493_v50, %v4492_v48  ;;  %v4495_v21 = vrot.slane %v4400_v23, 2 }
 0x851   :  { %v5087_v54 = vpop.f32.mrf.mxu1  ;;  %v4473_v26 = vpop.f32.mrf.mxu0 }
 0x852   :  { %v4496_v56 = vsel %vm2309_vm10, %v4495_v21, %v4494_v52  ;;  %v4497_v36 = vrot.slane %v4473_v26, 1 }
 0x853   :  { %v5092_v18 = vpop.f32.mrf.mxu0 }
 0x854   :  { %v4498_v47 = vsel %vm2312_vm11, %v4497_v36, %v4496_v56 }
 0x855   :  { %5098 = vmatmul.mubr.msk.f32.vlgmr.msra.gmra.mxu1 %vm394_vm2, %v4498_v47 }
 0x915   :  { %v4567_v59 = vpop.f32.mrf.mxu1 }
 0x916   :  { %v4571_v61 = vadd.f32 %v4567_v59, %v5793_v2 }
 0x917   :  { %v5099_v63 = vpop.f32.mrf.mxu1 }
 0x918   :  { %v4572_v15 = vadd.f32 %v5789_v1, %v4571_v61 }
 0x91a   :  { %4573 = vst.msk [vmem:[#allocation10] sm:$0xff] %vm144_vm1, %v4572_v15 }
 0x91b   :  { %5267 = shalt.err (!%p5264_p10)
}
 0x91c   :  { %4583 = dma.vmem_to_hbm [thread:$0]  %s4581_s12, 128, %s6014_s11, [#allocation4]  }
 0x91d   :  { %5282 = dma.done.wait [#allocation4], 128  }
 0x91e   :  { %5283 = vsyncadd [#allocation4], 4294967168 }
 0x91f   :  { %4587 = vsyncpa [#allocation3], 1 }
 0x920   :  { %4588 = vsyncpa [#allocation6], 1 }
 0x921   :  { %4589 = vsyncpa [#allocation9], 1 }
 0x922   :  { %4590 = vsyncpa [#allocation4], 1 }

</bundles_post_ra>
